<compile_context>
chip_gen: v6e
topology: v6e:2x2x1
jax: 0.10.0
libtpu: 0.0.40
codegen_flags: <defaults>
</compile_context>

<pallas_src>
import math
import functools

import jax
import jax.numpy as jnp
from jax import lax
from jax.experimental import pallas as pl
from jax.experimental.pallas import tpu as pltpu


def _round_up(x, m):
    return (x + m - 1) // m * m


def _lstm_recurrent_kernel(gx_ref, whh_ref, out_ref, hn_ref, cn_ref,
                           h_sc, c_sc, *, hp, tc_steps, seq_len, unroll,
                           mask_time):
    """One grid step = one (batch tile, time tile).

    gx_ref : (Tc, Bt, 4*Hp) recur_dtype  x@W_ih^T + (b_ih+b_hh), gate-major padded
    whh_ref: (Hp, 4*Hp)     recur_dtype  pre-transposed recurrent weight (resident)
    out_ref: (Tc, Bt, Hp)                hidden states for this tile
    hn_ref, cn_ref: (1, Bt, Hp)          final h / c (written on last time tile)
    h_sc: (Bt, Hp) recur_dtype           h carry across time grid steps
    c_sc: (Bt, Hp) f32                   c carry across time grid steps
    """
    g = pl.program_id(1)          # time-tile index (sequential, "arbitrary")

    @pl.when(g == 0)
    def _init():
        h_sc[...] = jnp.zeros_like(h_sc)
        c_sc[...] = jnp.zeros_like(c_sc)

    w = whh_ref[...]              # load once per grid step, reused by all Tc steps

    def step(tc, carry):
        h_prev, c_prev = carry
        # Recurrent contribution: (Bt, Hp) @ (Hp, 4Hp) -> f32 accumulate on MXU.
        # gx (bf16) is promoted and added to the f32 accumulator.
        gates = jnp.dot(h_prev, w, preferred_element_type=jnp.float32) + gx_ref[tc]
        # Lane-aligned gate slices (Hp is a multiple of 128). Gate math in f32.
        i_g = jax.nn.sigmoid(gates[:, 0 * hp:1 * hp])
        f_g = jax.nn.sigmoid(gates[:, 1 * hp:2 * hp])
        g_g = jnp.tanh(gates[:, 2 * hp:3 * hp])
        o_g = jax.nn.sigmoid(gates[:, 3 * hp:4 * hp])
        c_new = f_g * c_prev + i_g * g_g
        h_new = o_g * jnp.tanh(c_new)
        if mask_time:
            # Only emitted when T is not a multiple of Tc: padded time steps
            # keep the previous carry (cheap scalar-predicate selects).
            valid = g * tc_steps + tc < seq_len
            c_new = jnp.where(valid, c_new, c_prev)
            h_new = jnp.where(valid, h_new, h_prev.astype(h_new.dtype))
        out_ref[tc] = h_new.astype(out_ref.dtype)
        return h_new.astype(h_sc.dtype), c_new

    h_fin, c_fin = lax.fori_loop(0, tc_steps, step,
                                 (h_sc[...], c_sc[...]), unroll=unroll)
    h_sc[...] = h_fin
    c_sc[...] = c_fin

    @pl.when(g == pl.num_programs(1) - 1)
    def _finalize():
        hn_ref[0] = h_fin.astype(hn_ref.dtype)
        cn_ref[0] = c_fin.astype(cn_ref.dtype)


def lstm_pallas(x, w_ih, w_hh, b_ih, b_hh, *,
                time_block=16, batch_block=None, recur_dtype=jnp.bfloat16):
    """x: (T, B, I); w_ih: (4H, I); w_hh: (4H, H); b_ih, b_hh: (4H,).

    Returns (output (T,B,H), h_n (1,B,H), c_n (1,B,H)).
    Set recur_dtype=jnp.float32 for a bit-closer (slower) f32 path.
    """
    T, B, I = x.shape
    G, H = w_hh.shape
    assert G == 4 * H and w_ih.shape == (G, I)
    f32 = jnp.float32
    out_dtype = x.dtype

    Hp = _round_up(H, 128)                  # lane-aligned per-gate width

    # ---- batch tiling: fill the MXU M-dim, keep >=2 tiles for v7x megacore ----
    B8 = _round_up(max(B, 1), 8)
    if batch_block is None:
        Bt = min(B8, 128)                   # 128 rows fills v5e's MXU; fine on v6e/v7x
        if B8 // Bt < 2 and B8 >= 16:
            # Two half-size batch tiles so the "parallel" axis shards across
            # both v7x TensorCores (no effect on single-TC v5e/v6e).
            Bt = _round_up((B8 + 1) // 2, 8)
    else:
        Bt = _round_up(min(batch_block, B8), 8)
    Bp = _round_up(B8, Bt)
    n_bt = Bp // Bt

    # ---- time tiling: prefer a Tc that divides T (no per-step masking) ----
    Tc = max(1, min(time_block, T))
    if T % Tc != 0:
        d = Tc
        while d > 1 and T % d != 0:
            d -= 1
        if d >= max(1, Tc // 2):
            Tc = d
    Tp = _round_up(T, Tc)
    n_tt = Tp // Tc
    mask_time = (Tp != T)

    # Cap unroll so the per-step (Bt, 4*Hp) f32 gates tile doesn't spill vregs.
    step_vregs = (Bt * 4 * Hp * 4) // 4096
    if step_vregs <= 8:
        unroll = min(Tc, 8)
    elif step_vregs <= 24:
        unroll = min(Tc, 4)
    else:
        unroll = min(Tc, 2)

    # ---- hoisted input projection: one bf16 GEMM (f32 accumulate) straight
    #      into the gate-major padded [i|f|g|o]*Hp layout ----
    bias_g = (b_ih + b_hh).astype(f32).reshape(4, H)
    bias_g = jnp.pad(bias_g, ((0, 0), (0, Hp - H))).reshape(4 * Hp)

    w_ih_g = w_ih.reshape(4, H, I)                                   # (gate, out, in)
    w_ih_g = jnp.pad(w_ih_g, ((0, 0), (0, Hp - H), (0, 0)))
    w_ih_g = jnp.transpose(w_ih_g, (2, 0, 1)).reshape(I, 4 * Hp)     # (in, gate*out)

    x_p = jnp.pad(x, ((0, Tp - T), (0, Bp - B), (0, 0)))             # pad x (small) not gx
    gx = jnp.dot(x_p.reshape(Tp * Bp, I).astype(recur_dtype),
                 w_ih_g.astype(recur_dtype),
                 preferred_element_type=f32)
    gx = (gx + bias_g).astype(recur_dtype).reshape(Tp, Bp, 4 * Hp)   # bf16 stream

    # ---- pre-transposed, gate-major padded recurrent weight ----
    whh = w_hh.reshape(4, H, H)                                      # (gate, out, in)
    whh = jnp.pad(whh, ((0, 0), (0, Hp - H), (0, Hp - H)))
    whh_t = jnp.transpose(whh, (2, 0, 1)).reshape(Hp, 4 * Hp)        # (in, gate*out)
    whh_t = whh_t.astype(recur_dtype)

    # ---- specs + VMEM budget ----
    rbytes = jnp.dtype(recur_dtype).itemsize
    obytes = jnp.dtype(out_dtype).itemsize

    whh_spec = pl.BlockSpec((Hp, 4 * Hp), lambda b, g: (0, 0))
    whh_bufs = 2
    whh_bytes = Hp * 4 * Hp * rbytes
    if whh_bytes >= (4 << 20):
        # Constant-index weight: single-buffer to halve its VMEM residency
        # (mandatory headroom at large H on v7x's 64 MiB VMEM).
        try:
            whh_spec = pl.BlockSpec((Hp, 4 * Hp), lambda b, g: (0, 0),
                                    pipeline_mode=pl.Buffered(1))
            whh_bufs = 1
        except (TypeError, AttributeError):
            pass

    vmem_est = (whh_bufs * whh_bytes
                + 2 * Tc * Bt * 4 * Hp * rbytes     # gx tiles (double-buffered)
                + 2 * Tc * Bt * Hp * obytes         # output tiles
                + 4 * Bt * Hp * obytes              # h_n / c_n tiles
                + Bt * Hp * (rbytes + 4))           # carries
    vmem_limit = min(max(int(vmem_est) * 3 // 2 + (2 << 20), 16 << 20), 100 << 20)
    # TODO(synk): for H >= ~2048 on v7x (64 MiB VMEM) the single-resident-weight
    # design no longer fits; the hidden/gate axis would need to be split.

    out_shapes = (
        jax.ShapeDtypeStruct((Tp, Bp, Hp), out_dtype),   # output (padded)
        jax.ShapeDtypeStruct((1, Bp, Hp), out_dtype),    # h_n (padded)
        jax.ShapeDtypeStruct((1, Bp, Hp), out_dtype),    # c_n (padded)
    )

    grid_spec = pltpu.PrefetchScalarGridSpec(
        num_scalar_prefetch=0,
        grid=(n_bt, n_tt),                               # (batch tiles, time tiles)
        in_specs=[
            pl.BlockSpec((Tc, Bt, 4 * Hp), lambda b, g: (g, b, 0)),   # gx tile (bf16)
            whh_spec,                                                 # W_hh^T resident
        ],
        out_specs=[
            pl.BlockSpec((Tc, Bt, Hp), lambda b, g: (g, b, 0)),       # output tile
            pl.BlockSpec((1, Bt, Hp), lambda b, g: (0, b, 0)),        # h_n
            pl.BlockSpec((1, Bt, Hp), lambda b, g: (0, b, 0)),        # c_n
        ],
        scratch_shapes=[
            pltpu.VMEM((Bt, Hp), recur_dtype),   # h carry (bf16)
            pltpu.VMEM((Bt, Hp), f32),           # c carry (f32)
        ],
    )

    kernel = functools.partial(_lstm_recurrent_kernel,
                               hp=Hp, tc_steps=Tc, seq_len=T,
                               unroll=unroll, mask_time=mask_time)

    out_p, hn_p, cn_p = pl.pallas_call(
        kernel,
        out_shape=out_shapes,
        grid_spec=grid_spec,
        compiler_params=pltpu.CompilerParams(
            # batch tiles are independent (megacore/v7x); time is sequential.
            dimension_semantics=("parallel", "arbitrary"),
            vmem_limit_bytes=vmem_limit),
    )(gx, whh_t)

    output = out_p[:T, :B, :H]
    h_n = hn_p[:, :B, :H]
    c_n = cn_p[:, :B, :H]
    return output, h_n, c_n


class CurveLSTM:
    """JAX equivalent of curves.LSTM (num_layers=1, unidirectional, bias=True)."""
    # TODO(synk): PackedSequence inputs, num_layers>1, bidirectional and dropout
    # paths of the torch LSTM are not implemented (module defaults are used).

    def __init__(self, input_size, hidden_size, fix_points, key):
        self.input_size = input_size
        self.hidden_size = hidden_size
        self.fix_points = fix_points
        self.num_bends = len(fix_points)
        self.l2 = 0.0
        G = 4 * hidden_size
        stdv = 1.0 / math.sqrt(hidden_size)

        keys = jax.random.split(key, 4 * self.num_bends)
        uni = lambda k, shape: jax.random.uniform(
            k, shape, minval=-stdv, maxval=stdv, dtype=jnp.float32)

        # per-bend parameter copies (mirrors reset_parameters)
        self.weight_ih = [uni(keys[4 * j + 0], (G, input_size)) for j in range(self.num_bends)]
        self.weight_hh = [uni(keys[4 * j + 1], (G, hidden_size)) for j in range(self.num_bends)]
        self.bias_ih = [uni(keys[4 * j + 2], (G,)) for j in range(self.num_bends)]
        self.bias_hh = [uni(keys[4 * j + 3], (G,)) for j in range(self.num_bends)]

    def compute_weights_t(self, coeffs_t):
        self.l2 = 0.0
        blended = []
        for params in (self.weight_ih, self.weight_hh, self.bias_ih, self.bias_hh):
            w = None
            for p, c in zip(params, coeffs_t):
                w = p * c if w is None else w + p * c
            self.l2 = self.l2 + jnp.sum(w ** 2)
            blended.append(w)
        return tuple(blended)

    def __call__(self, x, coeffs_t):
        # x: (T, B, input_size)  [batch_first=False]
        w_ih, w_hh, b_ih, b_hh = self.compute_weights_t(coeffs_t)
        output, h_n, c_n = lstm_pallas(x, w_ih, w_hh, b_ih, b_hh)
        return output, (h_n, c_n)


def _lstm_reference(x, w_ih, w_hh, b_ih, b_hh):
    """Pure-JAX f32 reference for correctness checking."""
    T, B, I = x.shape
    H = w_hh.shape[1]
    h = jnp.zeros((B, H), jnp.float32)
    c = jnp.zeros((B, H), jnp.float32)
    outs = []
    for t in range(T):
        gates = x[t] @ w_ih.T + h @ w_hh.T + b_ih + b_hh
        i = jax.nn.sigmoid(gates[:, 0 * H:1 * H])
        f = jax.nn.sigmoid(gates[:, 1 * H:2 * H])
        g = jnp.tanh(gates[:, 2 * H:3 * H])
        o = jax.nn.sigmoid(gates[:, 3 * H:4 * H])
        c = f * c + i * g
        h = o * jnp.tanh(c)
        outs.append(h)
    return jnp.stack(outs), h, c


if __name__ == "__main__":
    key = jax.random.PRNGKey(0)
    k_param, k_x, k_2 = jax.random.split(key, 3)

    # ---- primary example: module-consistent small shapes ----
    T, B = 8, 2
    input_size, hidden_size = 16, 32
    fix_points = [True, False, True]          # num_bends = 3

    model = CurveLSTM(input_size, hidden_size, fix_points, k_param)
    x = jax.random.normal(k_x, (T, B, input_size), dtype=jnp.float32)
    coeffs_t = jnp.array([0.25, 0.5, 0.25], dtype=jnp.float32)

    output, (h_n, c_n) = model(x, coeffs_t)
    output = jax.block_until_ready(output)
    h_n = jax.block_until_ready(h_n)
    c_n = jax.block_until_ready(c_n)

    # Sanity check against a pure-JAX f32 reference. The kernel uses bf16
    # operands for the matmuls / gx stream (f32 accumulate), so use a
    # correspondingly loose tolerance.
    w_ih, w_hh, b_ih, b_hh = model.compute_weights_t(coeffs_t)
    ref_out, ref_h, ref_c = _lstm_reference(x, w_ih, w_hh, b_ih, b_hh)
    assert output.shape == (T, B, hidden_size)
    assert h_n.shape == (1, B, hidden_size) and c_n.shape == (1, B, hidden_size)
    assert jnp.allclose(output, ref_out, atol=3e-2, rtol=3e-2)
    assert jnp.allclose(h_n[0], ref_h, atol=3e-2, rtol=3e-2)
    assert jnp.allclose(c_n[0], ref_c, atol=3e-2, rtol=3e-2)

    # ---- secondary check: multiple batch tiles, multiple time tiles,
    #      sequence-length masking and H padding are all exercised ----
    T2, B2, I2, H2 = 13, 24, 16, 40
    ks = jax.random.split(k_2, 5)
    stdv2 = 1.0 / math.sqrt(H2)
    uni2 = lambda k, shape: jax.random.uniform(
        k, shape, minval=-stdv2, maxval=stdv2, dtype=jnp.float32)
    w_ih2 = uni2(ks[0], (4 * H2, I2))
    w_hh2 = uni2(ks[1], (4 * H2, H2))
    b_ih2 = uni2(ks[2], (4 * H2,))
    b_hh2 = uni2(ks[3], (4 * H2,))
    x2 = jax.random.normal(ks[4], (T2, B2, I2), dtype=jnp.float32)

    out2, hn2, cn2 = lstm_pallas(x2, w_ih2, w_hh2, b_ih2, b_hh2, time_block=8)
    out2 = jax.block_until_ready(out2)
    r_out2, r_h2, r_c2 = _lstm_reference(x2, w_ih2, w_hh2, b_ih2, b_hh2)
    assert out2.shape == (T2, B2, H2)
    assert jnp.allclose(out2, r_out2, atol=5e-2, rtol=5e-2)
    assert jnp.allclose(hn2[0], r_h2, atol=5e-2, rtol=5e-2)
    assert jnp.allclose(cn2[0], r_c2, atol=5e-2, rtol=5e-2)

    print("KERNEL_OK")
</pallas_src>

<mosaic_0001>
module attributes {stable_mosaic.version = 11 : i64} {
  func.func @_lstm_recurrent_kernel(%arg0: i32, %arg1: i32, %arg2: memref<8x8x512xbf16, #tpu.memory_space<vmem>>, %arg3: memref<128x512xbf16, #tpu.memory_space<vmem>>, %arg4: memref<8x8x128xf32, #tpu.memory_space<vmem>>, %arg5: memref<1x8x128xf32, #tpu.memory_space<vmem>>, %arg6: memref<1x8x128xf32, #tpu.memory_space<vmem>>, %arg7: memref<8x128xbf16, #tpu.memory_space<vmem>>, %arg8: memref<8x128xf32, #tpu.memory_space<vmem>>) attributes {dimension_semantics = [#tpu.dimension_semantics<parallel>, #tpu.dimension_semantics<arbitrary>], iteration_bounds = array<i64: 1, 1>, scalar_prefetch = 0 : i64, scratch_operands = 2 : i64, tpu.core_type = #tpu.core_type<tc>, window_params = [{transform_indices = @transform_0, window_bounds = array<i64: 8, 8, 512>}, {pipeline_mode = #tpu.pipeline_mode<synchronous>, transform_indices = @transform_1, window_bounds = array<i64: 128, 512>}, {transform_indices = @transform_2, window_bounds = array<i64: 8, 8, 128>}, {transform_indices = @transform_3, window_bounds = array<i64: 1, 8, 128>}, {transform_indices = @transform_4, window_bounds = array<i64: 1, 8, 128>}]} {
    %c0_i32 = arith.constant 0 : i32
    %0 = arith.cmpi eq, %arg1, %c0_i32 : i32
    %1 = arith.extui %0 : i1 to i32
    %c0_i32_0 = arith.constant 0 : i32
    %2 = arith.cmpi ne, %1, %c0_i32_0 : i32
    scf.if %2 {
      %cst_76 = arith.constant 0.000000e+00 : bf16
      %299 = vector.broadcast %cst_76 : bf16 to vector<8x128xbf16>
      %c0_77 = arith.constant 0 : index
      %c0_78 = arith.constant 0 : index
      %300 = vector.load %arg7[%c0_77, %c0_78] : memref<8x128xbf16, #tpu.memory_space<vmem>>, vector<8x128xbf16>
      tpu.vector_store %arg7[%c0_77, %c0_78], %299 {strides = array<i32>} : memref<8x128xbf16, #tpu.memory_space<vmem>>, vector<8x128xbf16>,
      %cst_79 = arith.constant 0.000000e+00 : f32
      %301 = vector.broadcast %cst_79 : f32 to vector<8x128xf32>
      %c0_80 = arith.constant 0 : index
      %c0_81 = arith.constant 0 : index
      %302 = vector.load %arg8[%c0_80, %c0_81] : memref<8x128xf32, #tpu.memory_space<vmem>>, vector<8x128xf32>
      tpu.vector_store %arg8[%c0_80, %c0_81], %301 {strides = array<i32>} : memref<8x128xf32, #tpu.memory_space<vmem>>, vector<8x128xf32>,
    } else {
    }
    %c0 = arith.constant 0 : index
    %c0_1 = arith.constant 0 : index
    %3 = vector.load %arg3[%c0, %c0_1] : memref<128x512xbf16, #tpu.memory_space<vmem>>, vector<128x512xbf16>
    %c0_2 = arith.constant 0 : index
    %c0_3 = arith.constant 0 : index
    %4 = vector.load %arg7[%c0_2, %c0_3] : memref<8x128xbf16, #tpu.memory_space<vmem>>, vector<8x128xbf16>
    %c0_4 = arith.constant 0 : index
    %c0_5 = arith.constant 0 : index
    %5 = vector.load %arg8[%c0_4, %c0_5] : memref<8x128xf32, #tpu.memory_space<vmem>>, vector<8x128xf32>
    %c0_i32_6 = arith.constant 0 : i32
    %cst = arith.constant dense<0.000000e+00> : vector<8x512xf32>
    %6 = tpu.matmul %4, %3, %cst {dimension_numbers = #tpu.dot_dimension_numbers<[1], [0], [0], [1], [0, 0, 1, 1], [], []>} : vector<8x128xbf16>, vector<128x512xbf16>, vector<8x512xf32> -> vector<8x512xf32>
    %7 = arith.index_cast %c0_i32_6 : i32 to index
    %c0_7 = arith.constant 0 : index
    %c0_8 = arith.constant 0 : index
    %8 = vector.load %arg2[%7, %c0_7, %c0_8] : memref<8x8x512xbf16, #tpu.memory_space<vmem>>, vector<1x8x512xbf16>
    %9 = vector.shape_cast %8 : vector<1x8x512xbf16> to vector<8x512xbf16>
    %10 = arith.extf %9 : vector<8x512xbf16> to vector<8x512xf32>
    %11 = arith.addf %6, %10 : vector<8x512xf32>
    %12 = vector.extract_strided_slice %11 {offsets = [0, 0], sizes = [8, 128], strides = [1, 1]} : vector<8x512xf32> to vector<8x128xf32>
    %13 = arith.negf %12 : vector<8x128xf32>
    %14 = math.exp %13 : vector<8x128xf32>
    %cst_9 = arith.constant 1.000000e+00 : f32
    %15 = vector.broadcast %cst_9 : f32 to vector<8x128xf32>
    %16 = arith.addf %15, %14 : vector<8x128xf32>
    %17 = arith.divf %15, %16 : vector<8x128xf32>
    %18 = vector.extract_strided_slice %11 {offsets = [0, 128], sizes = [8, 128], strides = [1, 1]} : vector<8x512xf32> to vector<8x128xf32>
    %19 = arith.negf %18 : vector<8x128xf32>
    %20 = math.exp %19 : vector<8x128xf32>
    %cst_10 = arith.constant 1.000000e+00 : f32
    %21 = vector.broadcast %cst_10 : f32 to vector<8x128xf32>
    %22 = arith.addf %21, %20 : vector<8x128xf32>
    %23 = arith.divf %21, %22 : vector<8x128xf32>
    %24 = vector.extract_strided_slice %11 {offsets = [0, 256], sizes = [8, 128], strides = [1, 1]} : vector<8x512xf32> to vector<8x128xf32>
    %25 = math.tanh %24 : vector<8x128xf32>
    %26 = vector.extract_strided_slice %11 {offsets = [0, 384], sizes = [8, 128], strides = [1, 1]} : vector<8x512xf32> to vector<8x128xf32>
    %27 = arith.negf %26 : vector<8x128xf32>
    %28 = math.exp %27 : vector<8x128xf32>
    %cst_11 = arith.constant 1.000000e+00 : f32
    %29 = vector.broadcast %cst_11 : f32 to vector<8x128xf32>
    %30 = arith.addf %29, %28 : vector<8x128xf32>
    %31 = arith.divf %29, %30 : vector<8x128xf32>
    %32 = arith.mulf %23, %5 : vector<8x128xf32>
    %33 = arith.mulf %17, %25 : vector<8x128xf32>
    %34 = arith.addf %32, %33 : vector<8x128xf32>
    %35 = math.tanh %34 : vector<8x128xf32>
    %36 = arith.mulf %31, %35 : vector<8x128xf32>
    %37 = arith.index_cast %c0_i32_6 : i32 to index
    %c0_12 = arith.constant 0 : index
    %c0_13 = arith.constant 0 : index
    %38 = vector.load %arg4[%37, %c0_12, %c0_13] : memref<8x8x128xf32, #tpu.memory_space<vmem>>, vector<1x8x128xf32>
    %39 = vector.shape_cast %38 : vector<1x8x128xf32> to vector<8x128xf32>
    %40 = vector.shape_cast %36 : vector<8x128xf32> to vector<1x8x128xf32>
    tpu.vector_store %arg4[%37, %c0_12, %c0_13], %40 {strides = array<i32>} : memref<8x8x128xf32, #tpu.memory_space<vmem>>, vector<1x8x128xf32>,
    %41 = arith.truncf %36 : vector<8x128xf32> to vector<8x128xbf16>
    %c1_i32 = arith.constant 1 : i32
    %cst_14 = arith.constant dense<0.000000e+00> : vector<8x512xf32>
    %42 = tpu.matmul %41, %3, %cst_14 {dimension_numbers = #tpu.dot_dimension_numbers<[1], [0], [0], [1], [0, 0, 1, 1], [], []>} : vector<8x128xbf16>, vector<128x512xbf16>, vector<8x512xf32> -> vector<8x512xf32>
    %43 = arith.index_cast %c1_i32 : i32 to index
    %c0_15 = arith.constant 0 : index
    %c0_16 = arith.constant 0 : index
    %44 = vector.load %arg2[%43, %c0_15, %c0_16] : memref<8x8x512xbf16, #tpu.memory_space<vmem>>, vector<1x8x512xbf16>
    %45 = vector.shape_cast %44 : vector<1x8x512xbf16> to vector<8x512xbf16>
    %46 = arith.extf %45 : vector<8x512xbf16> to vector<8x512xf32>
    %47 = arith.addf %42, %46 : vector<8x512xf32>
    %48 = vector.extract_strided_slice %47 {offsets = [0, 0], sizes = [8, 128], strides = [1, 1]} : vector<8x512xf32> to vector<8x128xf32>
    %49 = arith.negf %48 : vector<8x128xf32>
    %50 = math.exp %49 : vector<8x128xf32>
    %cst_17 = arith.constant 1.000000e+00 : f32
    %51 = vector.broadcast %cst_17 : f32 to vector<8x128xf32>
    %52 = arith.addf %51, %50 : vector<8x128xf32>
    %53 = arith.divf %51, %52 : vector<8x128xf32>
    %54 = vector.extract_strided_slice %47 {offsets = [0, 128], sizes = [8, 128], strides = [1, 1]} : vector<8x512xf32> to vector<8x128xf32>
    %55 = arith.negf %54 : vector<8x128xf32>
    %56 = math.exp %55 : vector<8x128xf32>
    %cst_18 = arith.constant 1.000000e+00 : f32
    %57 = vector.broadcast %cst_18 : f32 to vector<8x128xf32>
    %58 = arith.addf %57, %56 : vector<8x128xf32>
    %59 = arith.divf %57, %58 : vector<8x128xf32>
    %60 = vector.extract_strided_slice %47 {offsets = [0, 256], sizes = [8, 128], strides = [1, 1]} : vector<8x512xf32> to vector<8x128xf32>
    %61 = math.tanh %60 : vector<8x128xf32>
    %62 = vector.extract_strided_slice %47 {offsets = [0, 384], sizes = [8, 128], strides = [1, 1]} : vector<8x512xf32> to vector<8x128xf32>
    %63 = arith.negf %62 : vector<8x128xf32>
    %64 = math.exp %63 : vector<8x128xf32>
    %cst_19 = arith.constant 1.000000e+00 : f32
    %65 = vector.broadcast %cst_19 : f32 to vector<8x128xf32>
    %66 = arith.addf %65, %64 : vector<8x128xf32>
    %67 = arith.divf %65, %66 : vector<8x128xf32>
    %68 = arith.mulf %59, %34 : vector<8x128xf32>
    %69 = arith.mulf %53, %61 : vector<8x128xf32>
    %70 = arith.addf %68, %69 : vector<8x128xf32>
    %71 = math.tanh %70 : vector<8x128xf32>
    %72 = arith.mulf %67, %71 : vector<8x128xf32>
    %73 = arith.index_cast %c1_i32 : i32 to index
    %c0_20 = arith.constant 0 : index
    %c0_21 = arith.constant 0 : index
    %74 = vector.load %arg4[%73, %c0_20, %c0_21] : memref<8x8x128xf32, #tpu.memory_space<vmem>>, vector<1x8x128xf32>
    %75 = vector.shape_cast %74 : vector<1x8x128xf32> to vector<8x128xf32>
    %76 = vector.shape_cast %72 : vector<8x128xf32> to vector<1x8x128xf32>
    tpu.vector_store %arg4[%73, %c0_20, %c0_21], %76 {strides = array<i32>} : memref<8x8x128xf32, #tpu.memory_space<vmem>>, vector<1x8x128xf32>,
    %77 = arith.truncf %72 : vector<8x128xf32> to vector<8x128xbf16>
    %c2_i32 = arith.constant 2 : i32
    %cst_22 = arith.constant dense<0.000000e+00> : vector<8x512xf32>
    %78 = tpu.matmul %77, %3, %cst_22 {dimension_numbers = #tpu.dot_dimension_numbers<[1], [0], [0], [1], [0, 0, 1, 1], [], []>} : vector<8x128xbf16>, vector<128x512xbf16>, vector<8x512xf32> -> vector<8x512xf32>
    %79 = arith.index_cast %c2_i32 : i32 to index
    %c0_23 = arith.constant 0 : index
    %c0_24 = arith.constant 0 : index
    %80 = vector.load %arg2[%79, %c0_23, %c0_24] : memref<8x8x512xbf16, #tpu.memory_space<vmem>>, vector<1x8x512xbf16>
    %81 = vector.shape_cast %80 : vector<1x8x512xbf16> to vector<8x512xbf16>
    %82 = arith.extf %81 : vector<8x512xbf16> to vector<8x512xf32>
    %83 = arith.addf %78, %82 : vector<8x512xf32>
    %84 = vector.extract_strided_slice %83 {offsets = [0, 0], sizes = [8, 128], strides = [1, 1]} : vector<8x512xf32> to vector<8x128xf32>
    %85 = arith.negf %84 : vector<8x128xf32>
    %86 = math.exp %85 : vector<8x128xf32>
    %cst_25 = arith.constant 1.000000e+00 : f32
    %87 = vector.broadcast %cst_25 : f32 to vector<8x128xf32>
    %88 = arith.addf %87, %86 : vector<8x128xf32>
    %89 = arith.divf %87, %88 : vector<8x128xf32>
    %90 = vector.extract_strided_slice %83 {offsets = [0, 128], sizes = [8, 128], strides = [1, 1]} : vector<8x512xf32> to vector<8x128xf32>
    %91 = arith.negf %90 : vector<8x128xf32>
    %92 = math.exp %91 : vector<8x128xf32>
    %cst_26 = arith.constant 1.000000e+00 : f32
    %93 = vector.broadcast %cst_26 : f32 to vector<8x128xf32>
    %94 = arith.addf %93, %92 : vector<8x128xf32>
    %95 = arith.divf %93, %94 : vector<8x128xf32>
    %96 = vector.extract_strided_slice %83 {offsets = [0, 256], sizes = [8, 128], strides = [1, 1]} : vector<8x512xf32> to vector<8x128xf32>
    %97 = math.tanh %96 : vector<8x128xf32>
    %98 = vector.extract_strided_slice %83 {offsets = [0, 384], sizes = [8, 128], strides = [1, 1]} : vector<8x512xf32> to vector<8x128xf32>
    %99 = arith.negf %98 : vector<8x128xf32>
    %100 = math.exp %99 : vector<8x128xf32>
    %cst_27 = arith.constant 1.000000e+00 : f32
    %101 = vector.broadcast %cst_27 : f32 to vector<8x128xf32>
    %102 = arith.addf %101, %100 : vector<8x128xf32>
    %103 = arith.divf %101, %102 : vector<8x128xf32>
    %104 = arith.mulf %95, %70 : vector<8x128xf32>
    %105 = arith.mulf %89, %97 : vector<8x128xf32>
    %106 = arith.addf %104, %105 : vector<8x128xf32>
    %107 = math.tanh %106 : vector<8x128xf32>
    %108 = arith.mulf %103, %107 : vector<8x128xf32>
    %109 = arith.index_cast %c2_i32 : i32 to index
    %c0_28 = arith.constant 0 : index
    %c0_29 = arith.constant 0 : index
    %110 = vector.load %arg4[%109, %c0_28, %c0_29] : memref<8x8x128xf32, #tpu.memory_space<vmem>>, vector<1x8x128xf32>
    %111 = vector.shape_cast %110 : vector<1x8x128xf32> to vector<8x128xf32>
    %112 = vector.shape_cast %108 : vector<8x128xf32> to vector<1x8x128xf32>
    tpu.vector_store %arg4[%109, %c0_28, %c0_29], %112 {strides = array<i32>} : memref<8x8x128xf32, #tpu.memory_space<vmem>>, vector<1x8x128xf32>,
    %113 = arith.truncf %108 : vector<8x128xf32> to vector<8x128xbf16>
    %c3_i32 = arith.constant 3 : i32
    %cst_30 = arith.constant dense<0.000000e+00> : vector<8x512xf32>
    %114 = tpu.matmul %113, %3, %cst_30 {dimension_numbers = #tpu.dot_dimension_numbers<[1], [0], [0], [1], [0, 0, 1, 1], [], []>} : vector<8x128xbf16>, vector<128x512xbf16>, vector<8x512xf32> -> vector<8x512xf32>
    %115 = arith.index_cast %c3_i32 : i32 to index
    %c0_31 = arith.constant 0 : index
    %c0_32 = arith.constant 0 : index
    %116 = vector.load %arg2[%115, %c0_31, %c0_32] : memref<8x8x512xbf16, #tpu.memory_space<vmem>>, vector<1x8x512xbf16>
    %117 = vector.shape_cast %116 : vector<1x8x512xbf16> to vector<8x512xbf16>
    %118 = arith.extf %117 : vector<8x512xbf16> to vector<8x512xf32>
    %119 = arith.addf %114, %118 : vector<8x512xf32>
    %120 = vector.extract_strided_slice %119 {offsets = [0, 0], sizes = [8, 128], strides = [1, 1]} : vector<8x512xf32> to vector<8x128xf32>
    %121 = arith.negf %120 : vector<8x128xf32>
    %122 = math.exp %121 : vector<8x128xf32>
    %cst_33 = arith.constant 1.000000e+00 : f32
    %123 = vector.broadcast %cst_33 : f32 to vector<8x128xf32>
    %124 = arith.addf %123, %122 : vector<8x128xf32>
    %125 = arith.divf %123, %124 : vector<8x128xf32>
    %126 = vector.extract_strided_slice %119 {offsets = [0, 128], sizes = [8, 128], strides = [1, 1]} : vector<8x512xf32> to vector<8x128xf32>
    %127 = arith.negf %126 : vector<8x128xf32>
    %128 = math.exp %127 : vector<8x128xf32>
    %cst_34 = arith.constant 1.000000e+00 : f32
    %129 = vector.broadcast %cst_34 : f32 to vector<8x128xf32>
    %130 = arith.addf %129, %128 : vector<8x128xf32>
    %131 = arith.divf %129, %130 : vector<8x128xf32>
    %132 = vector.extract_strided_slice %119 {offsets = [0, 256], sizes = [8, 128], strides = [1, 1]} : vector<8x512xf32> to vector<8x128xf32>
    %133 = math.tanh %132 : vector<8x128xf32>
    %134 = vector.extract_strided_slice %119 {offsets = [0, 384], sizes = [8, 128], strides = [1, 1]} : vector<8x512xf32> to vector<8x128xf32>
    %135 = arith.negf %134 : vector<8x128xf32>
    %136 = math.exp %135 : vector<8x128xf32>
    %cst_35 = arith.constant 1.000000e+00 : f32
    %137 = vector.broadcast %cst_35 : f32 to vector<8x128xf32>
    %138 = arith.addf %137, %136 : vector<8x128xf32>
    %139 = arith.divf %137, %138 : vector<8x128xf32>
    %140 = arith.mulf %131, %106 : vector<8x128xf32>
    %141 = arith.mulf %125, %133 : vector<8x128xf32>
    %142 = arith.addf %140, %141 : vector<8x128xf32>
    %143 = math.tanh %142 : vector<8x128xf32>
    %144 = arith.mulf %139, %143 : vector<8x128xf32>
    %145 = arith.index_cast %c3_i32 : i32 to index
    %c0_36 = arith.constant 0 : index
    %c0_37 = arith.constant 0 : index
    %146 = vector.load %arg4[%145, %c0_36, %c0_37] : memref<8x8x128xf32, #tpu.memory_space<vmem>>, vector<1x8x128xf32>
    %147 = vector.shape_cast %146 : vector<1x8x128xf32> to vector<8x128xf32>
    %148 = vector.shape_cast %144 : vector<8x128xf32> to vector<1x8x128xf32>
    tpu.vector_store %arg4[%145, %c0_36, %c0_37], %148 {strides = array<i32>} : memref<8x8x128xf32, #tpu.memory_space<vmem>>, vector<1x8x128xf32>,
    %149 = arith.truncf %144 : vector<8x128xf32> to vector<8x128xbf16>
    %c4_i32 = arith.constant 4 : i32
    %cst_38 = arith.constant dense<0.000000e+00> : vector<8x512xf32>
    %150 = tpu.matmul %149, %3, %cst_38 {dimension_numbers = #tpu.dot_dimension_numbers<[1], [0], [0], [1], [0, 0, 1, 1], [], []>} : vector<8x128xbf16>, vector<128x512xbf16>, vector<8x512xf32> -> vector<8x512xf32>
    %151 = arith.index_cast %c4_i32 : i32 to index
    %c0_39 = arith.constant 0 : index
    %c0_40 = arith.constant 0 : index
    %152 = vector.load %arg2[%151, %c0_39, %c0_40] : memref<8x8x512xbf16, #tpu.memory_space<vmem>>, vector<1x8x512xbf16>
    %153 = vector.shape_cast %152 : vector<1x8x512xbf16> to vector<8x512xbf16>
    %154 = arith.extf %153 : vector<8x512xbf16> to vector<8x512xf32>
    %155 = arith.addf %150, %154 : vector<8x512xf32>
    %156 = vector.extract_strided_slice %155 {offsets = [0, 0], sizes = [8, 128], strides = [1, 1]} : vector<8x512xf32> to vector<8x128xf32>
    %157 = arith.negf %156 : vector<8x128xf32>
    %158 = math.exp %157 : vector<8x128xf32>
    %cst_41 = arith.constant 1.000000e+00 : f32
    %159 = vector.broadcast %cst_41 : f32 to vector<8x128xf32>
    %160 = arith.addf %159, %158 : vector<8x128xf32>
    %161 = arith.divf %159, %160 : vector<8x128xf32>
    %162 = vector.extract_strided_slice %155 {offsets = [0, 128], sizes = [8, 128], strides = [1, 1]} : vector<8x512xf32> to vector<8x128xf32>
    %163 = arith.negf %162 : vector<8x128xf32>
    %164 = math.exp %163 : vector<8x128xf32>
    %cst_42 = arith.constant 1.000000e+00 : f32
    %165 = vector.broadcast %cst_42 : f32 to vector<8x128xf32>
    %166 = arith.addf %165, %164 : vector<8x128xf32>
    %167 = arith.divf %165, %166 : vector<8x128xf32>
    %168 = vector.extract_strided_slice %155 {offsets = [0, 256], sizes = [8, 128], strides = [1, 1]} : vector<8x512xf32> to vector<8x128xf32>
    %169 = math.tanh %168 : vector<8x128xf32>
    %170 = vector.extract_strided_slice %155 {offsets = [0, 384], sizes = [8, 128], strides = [1, 1]} : vector<8x512xf32> to vector<8x128xf32>
    %171 = arith.negf %170 : vector<8x128xf32>
    %172 = math.exp %171 : vector<8x128xf32>
    %cst_43 = arith.constant 1.000000e+00 : f32
    %173 = vector.broadcast %cst_43 : f32 to vector<8x128xf32>
    %174 = arith.addf %173, %172 : vector<8x128xf32>
    %175 = arith.divf %173, %174 : vector<8x128xf32>
    %176 = arith.mulf %167, %142 : vector<8x128xf32>
    %177 = arith.mulf %161, %169 : vector<8x128xf32>
    %178 = arith.addf %176, %177 : vector<8x128xf32>
    %179 = math.tanh %178 : vector<8x128xf32>
    %180 = arith.mulf %175, %179 : vector<8x128xf32>
    %181 = arith.index_cast %c4_i32 : i32 to index
    %c0_44 = arith.constant 0 : index
    %c0_45 = arith.constant 0 : index
    %182 = vector.load %arg4[%181, %c0_44, %c0_45] : memref<8x8x128xf32, #tpu.memory_space<vmem>>, vector<1x8x128xf32>
    %183 = vector.shape_cast %182 : vector<1x8x128xf32> to vector<8x128xf32>
    %184 = vector.shape_cast %180 : vector<8x128xf32> to vector<1x8x128xf32>
    tpu.vector_store %arg4[%181, %c0_44, %c0_45], %184 {strides = array<i32>} : memref<8x8x128xf32, #tpu.memory_space<vmem>>, vector<1x8x128xf32>,
    %185 = arith.truncf %180 : vector<8x128xf32> to vector<8x128xbf16>
    %c5_i32 = arith.constant 5 : i32
    %cst_46 = arith.constant dense<0.000000e+00> : vector<8x512xf32>
    %186 = tpu.matmul %185, %3, %cst_46 {dimension_numbers = #tpu.dot_dimension_numbers<[1], [0], [0], [1], [0, 0, 1, 1], [], []>} : vector<8x128xbf16>, vector<128x512xbf16>, vector<8x512xf32> -> vector<8x512xf32>
    %187 = arith.index_cast %c5_i32 : i32 to index
    %c0_47 = arith.constant 0 : index
    %c0_48 = arith.constant 0 : index
    %188 = vector.load %arg2[%187, %c0_47, %c0_48] : memref<8x8x512xbf16, #tpu.memory_space<vmem>>, vector<1x8x512xbf16>
    %189 = vector.shape_cast %188 : vector<1x8x512xbf16> to vector<8x512xbf16>
    %190 = arith.extf %189 : vector<8x512xbf16> to vector<8x512xf32>
    %191 = arith.addf %186, %190 : vector<8x512xf32>
    %192 = vector.extract_strided_slice %191 {offsets = [0, 0], sizes = [8, 128], strides = [1, 1]} : vector<8x512xf32> to vector<8x128xf32>
    %193 = arith.negf %192 : vector<8x128xf32>
    %194 = math.exp %193 : vector<8x128xf32>
    %cst_49 = arith.constant 1.000000e+00 : f32
    %195 = vector.broadcast %cst_49 : f32 to vector<8x128xf32>
    %196 = arith.addf %195, %194 : vector<8x128xf32>
    %197 = arith.divf %195, %196 : vector<8x128xf32>
    %198 = vector.extract_strided_slice %191 {offsets = [0, 128], sizes = [8, 128], strides = [1, 1]} : vector<8x512xf32> to vector<8x128xf32>
    %199 = arith.negf %198 : vector<8x128xf32>
    %200 = math.exp %199 : vector<8x128xf32>
    %cst_50 = arith.constant 1.000000e+00 : f32
    %201 = vector.broadcast %cst_50 : f32 to vector<8x128xf32>
    %202 = arith.addf %201, %200 : vector<8x128xf32>
    %203 = arith.divf %201, %202 : vector<8x128xf32>
    %204 = vector.extract_strided_slice %191 {offsets = [0, 256], sizes = [8, 128], strides = [1, 1]} : vector<8x512xf32> to vector<8x128xf32>
    %205 = math.tanh %204 : vector<8x128xf32>
    %206 = vector.extract_strided_slice %191 {offsets = [0, 384], sizes = [8, 128], strides = [1, 1]} : vector<8x512xf32> to vector<8x128xf32>
    %207 = arith.negf %206 : vector<8x128xf32>
    %208 = math.exp %207 : vector<8x128xf32>
    %cst_51 = arith.constant 1.000000e+00 : f32
    %209 = vector.broadcast %cst_51 : f32 to vector<8x128xf32>
    %210 = arith.addf %209, %208 : vector<8x128xf32>
    %211 = arith.divf %209, %210 : vector<8x128xf32>
    %212 = arith.mulf %203, %178 : vector<8x128xf32>
    %213 = arith.mulf %197, %205 : vector<8x128xf32>
    %214 = arith.addf %212, %213 : vector<8x128xf32>
    %215 = math.tanh %214 : vector<8x128xf32>
    %216 = arith.mulf %211, %215 : vector<8x128xf32>
    %217 = arith.index_cast %c5_i32 : i32 to index
    %c0_52 = arith.constant 0 : index
    %c0_53 = arith.constant 0 : index
    %218 = vector.load %arg4[%217, %c0_52, %c0_53] : memref<8x8x128xf32, #tpu.memory_space<vmem>>, vector<1x8x128xf32>
    %219 = vector.shape_cast %218 : vector<1x8x128xf32> to vector<8x128xf32>
    %220 = vector.shape_cast %216 : vector<8x128xf32> to vector<1x8x128xf32>
    tpu.vector_store %arg4[%217, %c0_52, %c0_53], %220 {strides = array<i32>} : memref<8x8x128xf32, #tpu.memory_space<vmem>>, vector<1x8x128xf32>,
    %221 = arith.truncf %216 : vector<8x128xf32> to vector<8x128xbf16>
    %c6_i32 = arith.constant 6 : i32
    %cst_54 = arith.constant dense<0.000000e+00> : vector<8x512xf32>
    %222 = tpu.matmul %221, %3, %cst_54 {dimension_numbers = #tpu.dot_dimension_numbers<[1], [0], [0], [1], [0, 0, 1, 1], [], []>} : vector<8x128xbf16>, vector<128x512xbf16>, vector<8x512xf32> -> vector<8x512xf32>
    %223 = arith.index_cast %c6_i32 : i32 to index
    %c0_55 = arith.constant 0 : index
    %c0_56 = arith.constant 0 : index
    %224 = vector.load %arg2[%223, %c0_55, %c0_56] : memref<8x8x512xbf16, #tpu.memory_space<vmem>>, vector<1x8x512xbf16>
    %225 = vector.shape_cast %224 : vector<1x8x512xbf16> to vector<8x512xbf16>
    %226 = arith.extf %225 : vector<8x512xbf16> to vector<8x512xf32>
    %227 = arith.addf %222, %226 : vector<8x512xf32>
    %228 = vector.extract_strided_slice %227 {offsets = [0, 0], sizes = [8, 128], strides = [1, 1]} : vector<8x512xf32> to vector<8x128xf32>
    %229 = arith.negf %228 : vector<8x128xf32>
    %230 = math.exp %229 : vector<8x128xf32>
    %cst_57 = arith.constant 1.000000e+00 : f32
    %231 = vector.broadcast %cst_57 : f32 to vector<8x128xf32>
    %232 = arith.addf %231, %230 : vector<8x128xf32>
    %233 = arith.divf %231, %232 : vector<8x128xf32>
    %234 = vector.extract_strided_slice %227 {offsets = [0, 128], sizes = [8, 128], strides = [1, 1]} : vector<8x512xf32> to vector<8x128xf32>
    %235 = arith.negf %234 : vector<8x128xf32>
    %236 = math.exp %235 : vector<8x128xf32>
    %cst_58 = arith.constant 1.000000e+00 : f32
    %237 = vector.broadcast %cst_58 : f32 to vector<8x128xf32>
    %238 = arith.addf %237, %236 : vector<8x128xf32>
    %239 = arith.divf %237, %238 : vector<8x128xf32>
    %240 = vector.extract_strided_slice %227 {offsets = [0, 256], sizes = [8, 128], strides = [1, 1]} : vector<8x512xf32> to vector<8x128xf32>
    %241 = math.tanh %240 : vector<8x128xf32>
    %242 = vector.extract_strided_slice %227 {offsets = [0, 384], sizes = [8, 128], strides = [1, 1]} : vector<8x512xf32> to vector<8x128xf32>
    %243 = arith.negf %242 : vector<8x128xf32>
    %244 = math.exp %243 : vector<8x128xf32>
    %cst_59 = arith.constant 1.000000e+00 : f32
    %245 = vector.broadcast %cst_59 : f32 to vector<8x128xf32>
    %246 = arith.addf %245, %244 : vector<8x128xf32>
    %247 = arith.divf %245, %246 : vector<8x128xf32>
    %248 = arith.mulf %239, %214 : vector<8x128xf32>
    %249 = arith.mulf %233, %241 : vector<8x128xf32>
    %250 = arith.addf %248, %249 : vector<8x128xf32>
    %251 = math.tanh %250 : vector<8x128xf32>
    %252 = arith.mulf %247, %251 : vector<8x128xf32>
    %253 = arith.index_cast %c6_i32 : i32 to index
    %c0_60 = arith.constant 0 : index
    %c0_61 = arith.constant 0 : index
    %254 = vector.load %arg4[%253, %c0_60, %c0_61] : memref<8x8x128xf32, #tpu.memory_space<vmem>>, vector<1x8x128xf32>
    %255 = vector.shape_cast %254 : vector<1x8x128xf32> to vector<8x128xf32>
    %256 = vector.shape_cast %252 : vector<8x128xf32> to vector<1x8x128xf32>
    tpu.vector_store %arg4[%253, %c0_60, %c0_61], %256 {strides = array<i32>} : memref<8x8x128xf32, #tpu.memory_space<vmem>>, vector<1x8x128xf32>,
    %257 = arith.truncf %252 : vector<8x128xf32> to vector<8x128xbf16>
    %c7_i32 = arith.constant 7 : i32
    %cst_62 = arith.constant dense<0.000000e+00> : vector<8x512xf32>
    %258 = tpu.matmul %257, %3, %cst_62 {dimension_numbers = #tpu.dot_dimension_numbers<[1], [0], [0], [1], [0, 0, 1, 1], [], []>} : vector<8x128xbf16>, vector<128x512xbf16>, vector<8x512xf32> -> vector<8x512xf32>
    %259 = arith.index_cast %c7_i32 : i32 to index
    %c0_63 = arith.constant 0 : index
    %c0_64 = arith.constant 0 : index
    %260 = vector.load %arg2[%259, %c0_63, %c0_64] : memref<8x8x512xbf16, #tpu.memory_space<vmem>>, vector<1x8x512xbf16>
    %261 = vector.shape_cast %260 : vector<1x8x512xbf16> to vector<8x512xbf16>
    %262 = arith.extf %261 : vector<8x512xbf16> to vector<8x512xf32>
    %263 = arith.addf %258, %262 : vector<8x512xf32>
    %264 = vector.extract_strided_slice %263 {offsets = [0, 0], sizes = [8, 128], strides = [1, 1]} : vector<8x512xf32> to vector<8x128xf32>
    %265 = arith.negf %264 : vector<8x128xf32>
    %266 = math.exp %265 : vector<8x128xf32>
    %cst_65 = arith.constant 1.000000e+00 : f32
    %267 = vector.broadcast %cst_65 : f32 to vector<8x128xf32>
    %268 = arith.addf %267, %266 : vector<8x128xf32>
    %269 = arith.divf %267, %268 : vector<8x128xf32>
    %270 = vector.extract_strided_slice %263 {offsets = [0, 128], sizes = [8, 128], strides = [1, 1]} : vector<8x512xf32> to vector<8x128xf32>
    %271 = arith.negf %270 : vector<8x128xf32>
    %272 = math.exp %271 : vector<8x128xf32>
    %cst_66 = arith.constant 1.000000e+00 : f32
    %273 = vector.broadcast %cst_66 : f32 to vector<8x128xf32>
    %274 = arith.addf %273, %272 : vector<8x128xf32>
    %275 = arith.divf %273, %274 : vector<8x128xf32>
    %276 = vector.extract_strided_slice %263 {offsets = [0, 256], sizes = [8, 128], strides = [1, 1]} : vector<8x512xf32> to vector<8x128xf32>
    %277 = math.tanh %276 : vector<8x128xf32>
    %278 = vector.extract_strided_slice %263 {offsets = [0, 384], sizes = [8, 128], strides = [1, 1]} : vector<8x512xf32> to vector<8x128xf32>
    %279 = arith.negf %278 : vector<8x128xf32>
    %280 = math.exp %279 : vector<8x128xf32>
    %cst_67 = arith.constant 1.000000e+00 : f32
    %281 = vector.broadcast %cst_67 : f32 to vector<8x128xf32>
    %282 = arith.addf %281, %280 : vector<8x128xf32>
    %283 = arith.divf %281, %282 : vector<8x128xf32>
    %284 = arith.mulf %275, %250 : vector<8x128xf32>
    %285 = arith.mulf %269, %277 : vector<8x128xf32>
    %286 = arith.addf %284, %285 : vector<8x128xf32>
    %287 = math.tanh %286 : vector<8x128xf32>
    %288 = arith.mulf %283, %287 : vector<8x128xf32>
    %289 = arith.index_cast %c7_i32 : i32 to index
    %c0_68 = arith.constant 0 : index
    %c0_69 = arith.constant 0 : index
    %290 = vector.load %arg4[%289, %c0_68, %c0_69] : memref<8x8x128xf32, #tpu.memory_space<vmem>>, vector<1x8x128xf32>
    %291 = vector.shape_cast %290 : vector<1x8x128xf32> to vector<8x128xf32>
    %292 = vector.shape_cast %288 : vector<8x128xf32> to vector<1x8x128xf32>
    tpu.vector_store %arg4[%289, %c0_68, %c0_69], %292 {strides = array<i32>} : memref<8x8x128xf32, #tpu.memory_space<vmem>>, vector<1x8x128xf32>,
    %293 = arith.truncf %288 : vector<8x128xf32> to vector<8x128xbf16>
    %c8_i32 = arith.constant 8 : i32
    %c0_70 = arith.constant 0 : index
    %c0_71 = arith.constant 0 : index
    %294 = vector.load %arg7[%c0_70, %c0_71] : memref<8x128xbf16, #tpu.memory_space<vmem>>, vector<8x128xbf16>
    tpu.vector_store %arg7[%c0_70, %c0_71], %293 {strides = array<i32>} : memref<8x128xbf16, #tpu.memory_space<vmem>>, vector<8x128xbf16>,
    %c0_72 = arith.constant 0 : index
    %c0_73 = arith.constant 0 : index
    %295 = vector.load %arg8[%c0_72, %c0_73] : memref<8x128xf32, #tpu.memory_space<vmem>>, vector<8x128xf32>
    tpu.vector_store %arg8[%c0_72, %c0_73], %286 {strides = array<i32>} : memref<8x128xf32, #tpu.memory_space<vmem>>, vector<8x128xf32>,
    %c0_i32_74 = arith.constant 0 : i32
    %296 = arith.cmpi eq, %arg1, %c0_i32_74 : i32
    %297 = arith.extui %296 : i1 to i32
    %c0_i32_75 = arith.constant 0 : i32
    %298 = arith.cmpi ne, %297, %c0_i32_75 : i32
    scf.if %298 {
      %299 = arith.extf %293 : vector<8x128xbf16> to vector<8x128xf32>
      %c0_76 = arith.constant 0 : index
      %c0_77 = arith.constant 0 : index
      %c0_78 = arith.constant 0 : index
      %300 = vector.load %arg5[%c0_76, %c0_77, %c0_78] : memref<1x8x128xf32, #tpu.memory_space<vmem>>, vector<1x8x128xf32>
      %301 = vector.shape_cast %300 : vector<1x8x128xf32> to vector<8x128xf32>
      %302 = vector.shape_cast %299 : vector<8x128xf32> to vector<1x8x128xf32>
      tpu.vector_store %arg5[%c0_76, %c0_77, %c0_78], %302 {strides = array<i32>} : memref<1x8x128xf32, #tpu.memory_space<vmem>>, vector<1x8x128xf32>,
      %c0_79 = arith.constant 0 : index
      %c0_80 = arith.constant 0 : index
      %c0_81 = arith.constant 0 : index
      %303 = vector.load %arg6[%c0_79, %c0_80, %c0_81] : memref<1x8x128xf32, #tpu.memory_space<vmem>>, vector<1x8x128xf32>
      %304 = vector.shape_cast %303 : vector<1x8x128xf32> to vector<8x128xf32>
      %305 = vector.shape_cast %286 : vector<8x128xf32> to vector<1x8x128xf32>
      tpu.vector_store %arg6[%c0_79, %c0_80, %c0_81], %305 {strides = array<i32>} : memref<1x8x128xf32, #tpu.memory_space<vmem>>, vector<1x8x128xf32>,
    } else {
    }
    return
  }
  func.func @transform_0(%arg0: i32, %arg1: i32) -> (i32, i32, i32) {
    %c0_i32 = arith.constant 0 : i32
    %c0_i32_0 = arith.constant 0 : i32
    return %arg1, %arg0, %c0_i32 : i32, i32, i32
  }
  func.func @transform_1(%arg0: i32, %arg1: i32) -> (i32, i32) {
    %c0_i32 = arith.constant 0 : i32
    %c0_i32_0 = arith.constant 0 : i32
    %c0_i32_1 = arith.constant 0 : i32
    return %c0_i32, %c0_i32_0 : i32, i32
  }
  func.func @transform_2(%arg0: i32, %arg1: i32) -> (i32, i32, i32) {
    %c0_i32 = arith.constant 0 : i32
    %c0_i32_0 = arith.constant 0 : i32
    return %arg1, %arg0, %c0_i32 : i32, i32, i32
  }
  func.func @transform_3(%arg0: i32, %arg1: i32) -> (i32, i32, i32) {
    %c0_i32 = arith.constant 0 : i32
    %c0_i32_0 = arith.constant 0 : i32
    %c0_i32_1 = arith.constant 0 : i32
    return %c0_i32, %arg0, %c0_i32_0 : i32, i32, i32
  }
  func.func @transform_4(%arg0: i32, %arg1: i32) -> (i32, i32, i32) {
    %c0_i32 = arith.constant 0 : i32
    %c0_i32_0 = arith.constant 0 : i32
    %c0_i32_1 = arith.constant 0 : i32
    return %c0_i32, %arg0, %c0_i32_0 : i32, i32, i32
  }
}

</mosaic_0001>

<bundles_post_ra>
// kernel: tpu_custom_call.1
= control target key start
LH: loop header
LB: loop body
LE: loop exit
PB: predicated region body
PF: predicated region fallthrough
CT: control target
= control target key end

     0   :  { %10 = vsyncpa [#allocation5], 0  ;;  %s1985_s0 = inlined_call_operand.hbm [shape: bf16[8,8,512], index: 0, kind: input, shape index: {}]   ;;  %s1986_s1 = inlined_call_operand.hbm [shape: bf16[128,512], index: 1, kind: input, shape index: {}]   ;;  %s1987_s2 = inlined_call_operand.hbm [shape: f32[8,8,128], index: 2, kind: output, shape index: {0}]   ;;  %s1988_s3 = inlined_call_operand.hbm [shape: f32[1,8,128], index: 3, kind: output, shape index: {1}]   ;;  %s1989_s4 = inlined_call_operand.hbm [shape: f32[1,8,128], index: 4, kind: output, shape index: {2}]  }
   0x1   :  { %11 = vsyncpa [#allocation8], 0 }
   0x2   :  { %12 = vsyncpa [#allocation6], 0 }
   0x3   :  { %13 = vsyncpa [#allocation11], 0  ;;  %s1606_s15 = smov [#allocation4]  }
   0x4   :  { %s19_s16 = sshll.u32 %s1606_s15, 4  ;;  %s20_s16 = int_to_ptr.vmem [resolvable:$true] %s19_s16 }
   0x5   :  { %s1506_s17 = scalar_lea.vmem %s20_s16, 2048  ;;  %p1511_p1 = scmp.lt.s32.totalorder %s20_s16, %s20_s16 }
   0x6   :  { %p1507_p0 = scmp.ne.s32.totalorder %s20_s16, %s1506_s17  ;;  %p1512_p2 = scmp.lt.s32.totalorder %s1506_s17, %s1506_s17 }
   0x8   :  { %p1513_p3 = por %p1512_p2, %p1511_p1 }
   0xa   :  { %p1514_p4 = pnand %p1513_p3, %p1507_p0 }
   0xc   :  { %1517 = shalt.err (!%p1514_p4)
}
   0xd   :  { %s1607_s18 = smov 256   ;;  %s1608_s19 = smov 16  }
   0xe   :  { %25 = dma.hbm_to_vmem [thread:$0]  %s1985_s0, 2048, %s20_s16, [#allocation5], %s1607_s18, %s1607_s18, %s1608_s19  }
   0xf   :  { %s1609_s22 = smov [#allocation7]  }
  0x10   :  { %s31_s23 = sshll.u32 %s1609_s22, 4  ;;  %s32_s23 = int_to_ptr.vmem [resolvable:$true] %s31_s23 }
  0x11   :  { %s1526_s24 = scalar_lea.vmem %s32_s23, 4096  ;;  %p1531_p6 = scmp.lt.s32.totalorder %s32_s23, %s32_s23 }
  0x12   :  { %p1527_p5 = scmp.ne.s32.totalorder %s32_s23, %s1526_s24  ;;  %p1532_p7 = scmp.lt.s32.totalorder %s1526_s24, %s1526_s24 }
  0x14   :  { %p1533_p8 = por %p1532_p7, %p1531_p6 }
  0x16   :  { %p1534_p9 = pnand %p1533_p8, %p1527_p5 }
  0x18   :  { %1537 = shalt.err (!%p1534_p9)
}
  0x19   :  { %37 = dma.hbm_to_vmem [thread:$0]  %s1986_s1, 4096, %s32_s23, [#allocation8], %s1607_s18, %s1607_s18, %s1608_s19  }
  0x1a   :  { %1598 = dma.done.wait [#allocation5], 2048  }
  0x1b   :  { %1599 = vsyncadd [#allocation5], 4294965248 }
  0x1c   :  { %1600 = dma.done.wait [#allocation8], 4096  }
  0x1d   :  { %1601 = vsyncadd [#allocation8], 4294963200  ;;  %v1610_v0 = vmov 0   ;;  %v1650_v1 = vld [vmem:[#allocation7 + $0xe4] ss:$16 sps:$4 sm:$0xff]   ;;  %v86_v44 = vld [vmem:[#allocation4 + $0x8] sm:$0xff] }
  0x1e   :  { %283 = vmatprep.mubr.bf16.mxu0 %v1610_v0  ;;  %49 = vst [vmem:[#allocation2] sm:$0xf] %v1610_v0  ;;  %324 = vmatprep.mubr.bf16.mxu1 %v1610_v0  ;;  %v1652_v2 = vld [vmem:[#allocation7 + $0xe0] ss:$16 sps:$4 sm:$0xff]   ;;  %v1655_v3 = vld [vmem:[#allocation7 + $0xc4] ss:$16 sps:$4 sm:$0xff]   ;;  %v90_v48 = vunpack.c.h.bf16 %v86_v44  ;;  %v89_v50 = vunpack.c.l.bf16 %v86_v44 }
  0x1f   :  { %251 = vmatprep.subr.bf16.mxu0 %v1650_v1  ;;  %v1658_v4 = vld [vmem:[#allocation7 + $0xc0] ss:$16 sps:$4 sm:$0xff]   ;;  %v1661_v5 = vld [vmem:[#allocation7 + $0xa4] ss:$16 sps:$4 sm:$0xff]   ;;  %v1663_v6 = vld [vmem:[#allocation7 + $0xec] ss:$16 sps:$4 sm:$0xff]  }
  0x20   :  { %252 = vmatpush1.bf16.msra.mxu0 %v1652_v2  ;;  %v1665_v7 = vld [vmem:[#allocation7 + $0xe8] ss:$16 sps:$4 sm:$0xff]   ;;  %v1668_v8 = vld [vmem:[#allocation7 + $0xa0] ss:$16 sps:$4 sm:$0xff]   ;;  %292 = vmatprep.subr.bf16.mxu1 %v1663_v6  ;;  %v1672_v9 = vld [vmem:[#allocation7 + $0x84] ss:$16 sps:$4 sm:$0xff]  }
  0x21   :  { %253 = vmatprep.subr.bf16.mxu0 %v1655_v3  ;;  %293 = vmatpush1.bf16.msra.mxu1 %v1665_v7  ;;  %v1675_v10 = vld [vmem:[#allocation7 + $0xcc] ss:$16 sps:$4 sm:$0xff]   ;;  %v1677_v11 = vld [vmem:[#allocation7 + $0xc8] ss:$16 sps:$4 sm:$0xff]   ;;  %v1681_v12 = vld [vmem:[#allocation7 + $0x80] ss:$16 sps:$4 sm:$0xff]  }
  0x22   :  { %294 = vmatprep.subr.bf16.mxu1 %v1675_v10  ;;  %v1683_v13 = vld [vmem:[#allocation7 + $0x64] ss:$16 sps:$4 sm:$0xff]   ;;  %v1685_v14 = vld [vmem:[#allocation7 + $0xac] ss:$16 sps:$4 sm:$0xff]   ;;  %v1689_v15 = vld [vmem:[#allocation7 + $0xa8] ss:$16 sps:$4 sm:$0xff]  }
  0x23   :  { %v1692_v16 = vld [vmem:[#allocation7 + $0x8c] ss:$16 sps:$4 sm:$0xff]   ;;  %v1695_v17 = vld [vmem:[#allocation7 + $0x60] ss:$16 sps:$4 sm:$0xff]   ;;  %v1698_v18 = vld [vmem:[#allocation7 + $0x44] ss:$16 sps:$4 sm:$0xff]  }
  0x24   :  { %254 = vmatpush1.bf16.msra.mxu0 %v1658_v4  ;;  %v1701_v19 = vld [vmem:[#allocation7 + $0x88] ss:$16 sps:$4 sm:$0xff]   ;;  %v1704_v20 = vld [vmem:[#allocation7 + $0x6c] ss:$16 sps:$4 sm:$0xff]   ;;  %v1706_v21 = vld [vmem:[#allocation7 + $0x40] ss:$16 sps:$4 sm:$0xff]  }
  0x25   :  { %255 = vmatprep.subr.bf16.mxu0 %v1661_v5  ;;  %295 = vmatpush1.bf16.msra.mxu1 %v1677_v11  ;;  %v1709_v22 = vld [vmem:[#allocation7 + $0x24] ss:$16 sps:$4 sm:$0xff]   ;;  %v1713_v23 = vld [vmem:[#allocation7 + $0x68] ss:$16 sps:$4 sm:$0xff]   ;;  %v1716_v24 = vld [vmem:[#allocation7 + $0x4c] ss:$16 sps:$4 sm:$0xff]  }
  0x26   :  { %296 = vmatprep.subr.bf16.mxu1 %v1685_v14  ;;  %v1719_v25 = vld [vmem:[#allocation7 + $0x20] ss:$16 sps:$4 sm:$0xff]   ;;  %v1722_v26 = vld [vmem:[#allocation7 + $0x4] ss:$16 sps:$4 sm:$0xff]   ;;  %v1725_v27 = vld [vmem:[#allocation7 + $0x48] ss:$16 sps:$4 sm:$0xff]  }
  0x27   :  { %v1728_v28 = vld [vmem:[#allocation7 + $0x2c] ss:$16 sps:$4 sm:$0xff]   ;;  %v1731_v29 = vld [vmem:[#allocation7] ss:$16 sps:$4 sm:$0xff]   ;;  %v1735_v30 = vld [vmem:[#allocation7 + $0x28] ss:$16 sps:$4 sm:$0xff]  }
  0x28   :  { %256 = vmatpush1.bf16.msra.mxu0 %v1668_v8  ;;  %v1738_v31 = vld [vmem:[#allocation7 + $0xc] ss:$16 sps:$4 sm:$0xff]   ;;  %v1742_v33 = vld [vmem:[#allocation7 + $0x8] ss:$16 sps:$4 sm:$0xff]   ;;  %v85_v34 = vld [vmem:[#allocation4] sm:$0xff]  ;;  %s1611_s0 = smov [#allocation9]  }
  0x29   :  { %257 = vmatprep.subr.bf16.mxu0 %v1672_v9  ;;  %297 = vmatpush1.bf16.msra.mxu1 %v1689_v15  ;;  %v83_v32 = vld [vmem:[#allocation2] sm:$0xf]  ;;  %v87_v35 = vunpack.c.l.bf16 %v85_v34  ;;  %v88_v36 = vunpack.c.h.bf16 %v85_v34  ;;  %s1184_s1 = sshll.u32 %s1611_s0, 4  ;;  %s1612_s27 = smov [#allocation10]   ;;  %s1185_s1 = int_to_ptr.vmem [resolvable:$true] %s1184_s1 }
  0x2a   :  { %298 = vmatprep.subr.bf16.mxu1 %v1692_v16  ;;  %s1197_s28 = sshll.u32 %s1612_s27, 4  ;;  %s1613_s29 = smov [#allocation12]   ;;  %s1198_s28 = int_to_ptr.vmem [resolvable:$true] %s1197_s28 }
  0x2b   :  { %s1207_s30 = sshll.u32 %s1613_s29, 4  ;;  %s1538_s5 = scalar_lea.vmem %s1185_s1, 1024  ;;  %s1208_s30 = int_to_ptr.vmem [resolvable:$true] %s1207_s30 }
  0x2c   :  { %258 = vmatpush1.bf16.msra.mxu0 %v1681_v12  ;;  %p1539_p10 = scmp.ne.s32.totalorder %s1185_s1, %s1538_s5  ;;  %p1543_p11 = scmp.lt.s32.totalorder %s1185_s1, %s1185_s1 }
  0x2d   :  { %259 = vmatprep.subr.bf16.mxu0 %v1683_v13  ;;  %299 = vmatpush1.bf16.msra.mxu1 %v1701_v19  ;;  %p1544_p12 = scmp.lt.s32.totalorder %s1538_s5, %s1538_s5 }
  0x2e   :  { %300 = vmatprep.subr.bf16.mxu1 %v1704_v20 }
  0x2f   :  { %p1545_p13 = por %p1544_p12, %p1543_p11 }
  0x30   :  { %260 = vmatpush1.bf16.msra.mxu0 %v1695_v17 }
  0x31   :  { %261 = vmatprep.subr.bf16.mxu0 %v1698_v18  ;;  %301 = vmatpush1.bf16.msra.mxu1 %v1713_v23  ;;  %p1546_p0 = pnand %p1545_p13, %p1539_p10 }
  0x32   :  { %302 = vmatprep.subr.bf16.mxu1 %v1716_v24 }
  0x34   :  { %262 = vmatpush1.bf16.msra.mxu0 %v1706_v21 }
  0x35   :  { %263 = vmatprep.subr.bf16.mxu0 %v1709_v22  ;;  %303 = vmatpush1.bf16.msra.mxu1 %v1725_v27 }
  0x36   :  { %304 = vmatprep.subr.bf16.mxu1 %v1728_v28 }
  0x38   :  { %264 = vmatpush1.bf16.msra.mxu0 %v1719_v25 }
  0x39   :  { %265 = vmatprep.subr.bf16.mxu0 %v1722_v26  ;;  %305 = vmatpush1.bf16.msra.mxu1 %v1735_v30 }
  0x3a   :  { %306 = vmatprep.subr.bf16.mxu1 %v1738_v31 }
  0x3c   :  { %266 = vmatpush1.bf16.msra.mxu0 %v1731_v29 }
  0x3d   :  { %366 = vmatprep.subr.bf16.mxu0 %v1650_v1  ;;  %307 = vmatpush1.bf16.msra.mxu1 %v1742_v33 }
  0x3e   :  { %407 = vmatprep.subr.bf16.mxu1 %v1663_v6 }
  0x3f   :  { %284 = vmatmul.mubr.bf16.vlgmr.msra.gmra.mxu0 %v83_v32 }
  0x40   :  { %367 = vmatpush1.bf16.msra.mxu0 %v1652_v2  ;;  %398 = vmatprep.mubr.bf16.mxu0 %v1610_v0 }
  0x41   :  { %368 = vmatprep.subr.bf16.mxu0 %v1655_v3  ;;  %325 = vmatmul.mubr.bf16.vlgmr.msra.gmra.mxu1 %v83_v32 }
  0x42   :  { %408 = vmatpush1.bf16.msra.mxu1 %v1665_v7  ;;  %439 = vmatprep.mubr.bf16.mxu1 %v1610_v0 }
  0x43   :  { %409 = vmatprep.subr.bf16.mxu1 %v1675_v10 }
  0x44   :  { %369 = vmatpush1.bf16.msra.mxu0 %v1658_v4 }
  0x45   :  { %370 = vmatprep.subr.bf16.mxu0 %v1661_v5 }
  0x46   :  { %410 = vmatpush1.bf16.msra.mxu1 %v1677_v11 }
  0x47   :  { %411 = vmatprep.subr.bf16.mxu1 %v1685_v14 }
  0x48   :  { %371 = vmatpush1.bf16.msra.mxu0 %v1668_v8 }
  0x49   :  { %372 = vmatprep.subr.bf16.mxu0 %v1672_v9 }
  0x4a   :  { %412 = vmatpush1.bf16.msra.mxu1 %v1689_v15 }
  0x4b   :  { %413 = vmatprep.subr.bf16.mxu1 %v1692_v16 }
  0x4c   :  { %373 = vmatpush1.bf16.msra.mxu0 %v1681_v12 }
  0x4d   :  { %374 = vmatprep.subr.bf16.mxu0 %v1683_v13 }
  0x4e   :  { %414 = vmatpush1.bf16.msra.mxu1 %v1701_v19 }
  0x4f   :  { %415 = vmatprep.subr.bf16.mxu1 %v1704_v20 }
  0x50   :  { %375 = vmatpush1.bf16.msra.mxu0 %v1695_v17 }
  0x51   :  { %376 = vmatprep.subr.bf16.mxu0 %v1698_v18 }
  0x52   :  { %416 = vmatpush1.bf16.msra.mxu1 %v1713_v23 }
  0x53   :  { %417 = vmatprep.subr.bf16.mxu1 %v1716_v24 }
  0x54   :  { %377 = vmatpush1.bf16.msra.mxu0 %v1706_v21 }
  0x55   :  { %378 = vmatprep.subr.bf16.mxu0 %v1709_v22 }
  0x56   :  { %418 = vmatpush1.bf16.msra.mxu1 %v1725_v27 }
  0x57   :  { %419 = vmatprep.subr.bf16.mxu1 %v1728_v28 }
  0x58   :  { %379 = vmatpush1.bf16.msra.mxu0 %v1719_v25 }
  0x59   :  { %380 = vmatprep.subr.bf16.mxu0 %v1722_v26 }
  0x5a   :  { %420 = vmatpush1.bf16.msra.mxu1 %v1735_v30 }
  0x5b   :  { %421 = vmatprep.subr.bf16.mxu1 %v1738_v31 }
  0x5c   :  { %381 = vmatpush1.bf16.msra.mxu0 %v1731_v29 }
  0x5d   :  { %482 = vmatprep.subr.bf16.mxu0 %v1650_v1 }
  0x5e   :  { %422 = vmatpush1.bf16.msra.mxu1 %v1742_v33 }
  0x5f   :  { %523 = vmatprep.subr.bf16.mxu1 %v1663_v6 }
  0xff   :  { %v285_v37 = vpop.f32.mrf.mxu0 }
 0x100   :  { %v286_v38 = vadd.f32 %v285_v37, %v87_v35 }
 0x101   :  { %v287_v39 = vpop.f32.mrf.mxu0  ;;  %v326_v45 = vpop.f32.mrf.mxu1 }
 0x102   :  { %v1256_v40 = vmul.f32 -1.442695, %v286_v38  ;;  %v288_v41 = vadd.f32 %v287_v39, %v88_v36  ;;  %v327_v53 = vadd.f32 %v326_v45, %v89_v50 }
 0x103   :  { %v289_v42 = vpop.f32.mrf.mxu0  ;;  %v328_v47 = vpop.f32.mrf.mxu1 }
 0x104   :  { %1338 = vpow2.f32 %v1256_v40  ;;  %v1257_v43 = vmul.f32 -1.442695, %v288_v41  ;;  %v329_v52 = vadd.f32 %v328_v47, %v90_v48  ;;  %v360_v40 = vld [vmem:[#allocation4 + $0x10] sm:$0xff] }
 0x105   :  { %v290_v46 = vpop.f32.mrf.mxu0  ;;  %v330_v49 = vpop.f32.mrf.mxu1  ;;  %v362_v41 = vunpack.c.l.bf16 %v360_v40  ;;  %v363_v42 = vunpack.c.h.bf16 %v360_v40 }
 0x106   :  { %1340 = vpow2.f32 %v1257_v43  ;;  %v1258_v54 = vmul.f32 -1.442695, %v329_v52 }
 0x107   :  { %v331_v51 = vpop.f32.mrf.mxu1  ;;  %1342 = vtanh.f32 %v327_v53 }
 0x108   :  { %1344 = vpow2.f32 %v1258_v54 }
 0x111   :  { %v1339_v55 = vpop.eup %1338 }
 0x112   :  { %v336_v56 = vadd.f32 1.0, %v1339_v55  ;;  %v361_v55 = vld [vmem:[#allocation4 + $0x18] sm:$0xff] }
 0x113   :  { %v1341_v57 = vpop.eup %1340 }
 0x114   :  { %1346 = vrcp.f32 %v336_v56  ;;  %v342_v58 = vadd.f32 1.0, %v1341_v57  ;;  %v1343_v59 = vpop.eup %1342  ;;  %v365_v56 = vunpack.c.h.bf16 %v361_v55 }
 0x115   :  { %v1345_v60 = vpop.eup %1344 }
 0x116   :  { %1348 = vrcp.f32 %v342_v58  ;;  %v349_v63 = vadd.f32 1.0, %v1345_v60  ;;  %v364_v58 = vunpack.c.l.bf16 %v361_v55 }
 0x118   :  { %1350 = vrcp.f32 %v349_v63 }
 0x121   :  { %v1347_v61 = vpop.eup %1346 }
 0x122   :  { %v353_v34 = vmul.f32 %v1347_v61, %v1343_v59 }
 0x123   :  { %v1349_v62 = vpop.eup %1348 }
 0x124   :  { %v352_v32 = vmul.f32 0.0, %v1349_v62 }
 0x125   :  { %v1351_v36 = vpop.eup %1350 }
 0x126   :  { %v1782_v35 = vadd.f32 %v353_v34, %v352_v32 }
 0x128   :  { %1352 = vtanh.f32 %v1782_v35 }
 0x135   :  { %v1353_v37 = vpop.eup %1352 }
 0x136   :  { %v356_v38 = vmul.f32 %v1353_v37, %v1351_v36 }
 0x138   :  { %357 = vst [vmem:[#allocation9] sm:$0xff] %v356_v38  ;;  %v358_v39 = vpack.c.bf16 %v356_v38, %v356_v38 }
 0x13a   :  { %399 = vmatmul.mubr.bf16.vlgmr.msra.gmra.mxu0 %v358_v39  ;;  %440 = vmatmul.mubr.bf16.vlgmr.msra.gmra.mxu1 %v358_v39 }
 0x13b   :  { %483 = vmatpush1.bf16.msra.mxu0 %v1652_v2  ;;  %524 = vmatpush1.bf16.msra.mxu1 %v1665_v7 }
 0x13c   :  { %484 = vmatprep.subr.bf16.mxu0 %v1655_v3  ;;  %525 = vmatprep.subr.bf16.mxu1 %v1675_v10 }
 0x13d   :  { %514 = vmatprep.mubr.bf16.mxu0 %v1610_v0  ;;  %555 = vmatprep.mubr.bf16.mxu1 %v1610_v0 }
 0x13f   :  { %485 = vmatpush1.bf16.msra.mxu0 %v1658_v4  ;;  %526 = vmatpush1.bf16.msra.mxu1 %v1677_v11 }
 0x140   :  { %486 = vmatprep.subr.bf16.mxu0 %v1661_v5  ;;  %527 = vmatprep.subr.bf16.mxu1 %v1685_v14 }
 0x143   :  { %487 = vmatpush1.bf16.msra.mxu0 %v1668_v8  ;;  %528 = vmatpush1.bf16.msra.mxu1 %v1689_v15 }
 0x144   :  { %488 = vmatprep.subr.bf16.mxu0 %v1672_v9  ;;  %529 = vmatprep.subr.bf16.mxu1 %v1692_v16 }
 0x147   :  { %489 = vmatpush1.bf16.msra.mxu0 %v1681_v12  ;;  %530 = vmatpush1.bf16.msra.mxu1 %v1701_v19 }
 0x148   :  { %490 = vmatprep.subr.bf16.mxu0 %v1683_v13  ;;  %531 = vmatprep.subr.bf16.mxu1 %v1704_v20 }
 0x14b   :  { %491 = vmatpush1.bf16.msra.mxu0 %v1695_v17  ;;  %532 = vmatpush1.bf16.msra.mxu1 %v1713_v23 }
 0x14c   :  { %492 = vmatprep.subr.bf16.mxu0 %v1698_v18  ;;  %533 = vmatprep.subr.bf16.mxu1 %v1716_v24 }
 0x14f   :  { %493 = vmatpush1.bf16.msra.mxu0 %v1706_v21  ;;  %534 = vmatpush1.bf16.msra.mxu1 %v1725_v27 }
 0x150   :  { %494 = vmatprep.subr.bf16.mxu0 %v1709_v22  ;;  %535 = vmatprep.subr.bf16.mxu1 %v1728_v28 }
 0x153   :  { %495 = vmatpush1.bf16.msra.mxu0 %v1719_v25  ;;  %536 = vmatpush1.bf16.msra.mxu1 %v1735_v30 }
 0x154   :  { %496 = vmatprep.subr.bf16.mxu0 %v1722_v26  ;;  %537 = vmatprep.subr.bf16.mxu1 %v1738_v31 }
 0x157   :  { %497 = vmatpush1.bf16.msra.mxu0 %v1731_v29  ;;  %538 = vmatpush1.bf16.msra.mxu1 %v1742_v33 }
 0x158   :  { %598 = vmatprep.subr.bf16.mxu0 %v1650_v1  ;;  %639 = vmatprep.subr.bf16.mxu1 %v1663_v6 }
 0x1fa   :  { %v400_v43 = vpop.f32.mrf.mxu0  ;;  %v441_v44 = vpop.f32.mrf.mxu1 }
 0x1fb   :  { %v401_v45 = vadd.f32 %v400_v43, %v362_v41  ;;  %v442_v61 = vadd.f32 %v441_v44, %v364_v58 }
 0x1fc   :  { %v402_v46 = vpop.f32.mrf.mxu0  ;;  %v443_v47 = vpop.f32.mrf.mxu1 }
 0x1fd   :  { %v1259_v48 = vmul.f32 -1.442695, %v401_v45  ;;  %v403_v49 = vadd.f32 %v402_v46, %v363_v42  ;;  %v444_v57 = vadd.f32 %v443_v47, %v365_v56 }
 0x1fe   :  { %v404_v50 = vpop.f32.mrf.mxu0  ;;  %v445_v51 = vpop.f32.mrf.mxu1 }
 0x1ff   :  { %1354 = vpow2.f32 %v1259_v48  ;;  %v1260_v52 = vmul.f32 -1.442695, %v403_v49  ;;  %v1261_v59 = vmul.f32 -1.442695, %v444_v57 }
 0x200   :  { %v405_v53 = vpop.f32.mrf.mxu0  ;;  %v446_v54 = vpop.f32.mrf.mxu1 }
 0x201   :  { %1356 = vpow2.f32 %v1260_v52 }
 0x202   :  { %1358 = vpow2.f32 %v1261_v59 }
 0x20c   :  { %v1355_v60 = vpop.eup %1354 }
 0x20d   :  { %v451_v62 = vadd.f32 1.0, %v1355_v60 }
 0x20e   :  { %v1357_v63 = vpop.eup %1356 }
 0x20f   :  { %1360 = vrcp.f32 %v451_v62  ;;  %v457_v32 = vadd.f32 1.0, %v1357_v63  ;;  %v1359_v34 = vpop.eup %1358 }
 0x210   :  { %1362 = vtanh.f32 %v442_v61  ;;  %v464_v39 = vadd.f32 1.0, %v1359_v34  ;;  %v477_v61 = vld [vmem:[#allocation4 + $0x28] sm:$0xff] }
 0x211   :  { %1364 = vrcp.f32 %v457_v32  ;;  %v481_v62 = vunpack.c.h.bf16 %v477_v61  ;;  %v480_v32 = vunpack.c.l.bf16 %v477_v61 }
 0x212   :  { %1366 = vrcp.f32 %v464_v39 }
 0x21c   :  { %v1361_v36 = vpop.eup %1360 }
 0x21d   :  { %v1363_v37 = vpop.eup %1362 }
 0x21e   :  { %v1365_v38 = vpop.eup %1364  ;;  %v468_v40 = vmul.f32 %v1363_v37, %v1361_v36 }
 0x21f   :  { %v467_v41 = vmul.f32 %v1365_v38, %v1782_v35  ;;  %v1367_v43 = vpop.eup %1366  ;;  %v476_v35 = vld [vmem:[#allocation4 + $0x20] sm:$0xff] }
 0x220   :  { %v478_v47 = vunpack.c.l.bf16 %v476_v35  ;;  %v479_v48 = vunpack.c.h.bf16 %v476_v35 }
 0x221   :  { %v1820_v42 = vadd.f32 %v468_v40, %v467_v41 }
 0x223   :  { %1368 = vtanh.f32 %v1820_v42 }
 0x230   :  { %v1369_v44 = vpop.eup %1368 }
 0x231   :  { %v471_v45 = vmul.f32 %v1369_v44, %v1367_v43 }
 0x233   :  { %473 = vst [vmem:[#allocation9 + $0x8] sm:$0xff] %v471_v45  ;;  %v474_v46 = vpack.c.bf16 %v471_v45, %v471_v45 }
 0x235   :  { %515 = vmatmul.mubr.bf16.vlgmr.msra.gmra.mxu0 %v474_v46  ;;  %556 = vmatmul.mubr.bf16.vlgmr.msra.gmra.mxu1 %v474_v46 }
 0x236   :  { %599 = vmatpush1.bf16.msra.mxu0 %v1652_v2  ;;  %640 = vmatpush1.bf16.msra.mxu1 %v1665_v7 }
 0x237   :  { %600 = vmatprep.subr.bf16.mxu0 %v1655_v3  ;;  %641 = vmatprep.subr.bf16.mxu1 %v1675_v10 }
 0x238   :  { %630 = vmatprep.mubr.bf16.mxu0 %v1610_v0  ;;  %671 = vmatprep.mubr.bf16.mxu1 %v1610_v0 }
 0x23a   :  { %601 = vmatpush1.bf16.msra.mxu0 %v1658_v4  ;;  %642 = vmatpush1.bf16.msra.mxu1 %v1677_v11 }
 0x23b   :  { %602 = vmatprep.subr.bf16.mxu0 %v1661_v5  ;;  %643 = vmatprep.subr.bf16.mxu1 %v1685_v14 }
 0x23e   :  { %603 = vmatpush1.bf16.msra.mxu0 %v1668_v8  ;;  %644 = vmatpush1.bf16.msra.mxu1 %v1689_v15 }
 0x23f   :  { %604 = vmatprep.subr.bf16.mxu0 %v1672_v9  ;;  %645 = vmatprep.subr.bf16.mxu1 %v1692_v16 }
 0x242   :  { %605 = vmatpush1.bf16.msra.mxu0 %v1681_v12  ;;  %646 = vmatpush1.bf16.msra.mxu1 %v1701_v19 }
 0x243   :  { %606 = vmatprep.subr.bf16.mxu0 %v1683_v13  ;;  %647 = vmatprep.subr.bf16.mxu1 %v1704_v20 }
 0x246   :  { %607 = vmatpush1.bf16.msra.mxu0 %v1695_v17  ;;  %648 = vmatpush1.bf16.msra.mxu1 %v1713_v23 }
 0x247   :  { %608 = vmatprep.subr.bf16.mxu0 %v1698_v18  ;;  %649 = vmatprep.subr.bf16.mxu1 %v1716_v24 }
 0x24a   :  { %609 = vmatpush1.bf16.msra.mxu0 %v1706_v21  ;;  %650 = vmatpush1.bf16.msra.mxu1 %v1725_v27 }
 0x24b   :  { %610 = vmatprep.subr.bf16.mxu0 %v1709_v22  ;;  %651 = vmatprep.subr.bf16.mxu1 %v1728_v28 }
 0x24e   :  { %611 = vmatpush1.bf16.msra.mxu0 %v1719_v25  ;;  %652 = vmatpush1.bf16.msra.mxu1 %v1735_v30 }
 0x24f   :  { %612 = vmatprep.subr.bf16.mxu0 %v1722_v26  ;;  %653 = vmatprep.subr.bf16.mxu1 %v1738_v31 }
 0x252   :  { %613 = vmatpush1.bf16.msra.mxu0 %v1731_v29  ;;  %654 = vmatpush1.bf16.msra.mxu1 %v1742_v33 }
 0x253   :  { %714 = vmatprep.subr.bf16.mxu0 %v1650_v1  ;;  %755 = vmatprep.subr.bf16.mxu1 %v1663_v6 }
 0x2f5   :  { %v516_v49 = vpop.f32.mrf.mxu0  ;;  %v557_v50 = vpop.f32.mrf.mxu1 }
 0x2f6   :  { %v517_v51 = vadd.f32 %v516_v49, %v478_v47  ;;  %v558_v37 = vadd.f32 %v557_v50, %v480_v32 }
 0x2f7   :  { %v518_v52 = vpop.f32.mrf.mxu0  ;;  %v559_v53 = vpop.f32.mrf.mxu1 }
 0x2f8   :  { %v1262_v54 = vmul.f32 -1.442695, %v517_v51  ;;  %v519_v55 = vadd.f32 %v518_v52, %v479_v48  ;;  %v560_v63 = vadd.f32 %v559_v53, %v481_v62 }
 0x2f9   :  { %v520_v56 = vpop.f32.mrf.mxu0  ;;  %v561_v57 = vpop.f32.mrf.mxu1 }
 0x2fa   :  { %1370 = vpow2.f32 %v1262_v54  ;;  %v1263_v58 = vmul.f32 -1.442695, %v519_v55  ;;  %v1264_v34 = vmul.f32 -1.442695, %v560_v63 }
 0x2fb   :  { %v521_v59 = vpop.f32.mrf.mxu0  ;;  %v562_v60 = vpop.f32.mrf.mxu1 }
 0x2fc   :  { %1372 = vpow2.f32 %v1263_v58 }
 0x2fd   :  { %1374 = vpow2.f32 %v1264_v34 }
 0x307   :  { %v1371_v36 = vpop.eup %1370 }
 0x308   :  { %v567_v38 = vadd.f32 1.0, %v1371_v36 }
 0x309   :  { %v1373_v39 = vpop.eup %1372 }
 0x30a   :  { %1376 = vrcp.f32 %v567_v38  ;;  %v573_v40 = vadd.f32 1.0, %v1373_v39  ;;  %v1375_v41 = vpop.eup %1374 }
 0x30b   :  { %1378 = vtanh.f32 %v558_v37  ;;  %v580_v46 = vadd.f32 1.0, %v1375_v41  ;;  %v593_v37 = vld [vmem:[#allocation4 + $0x38] sm:$0xff] }
 0x30c   :  { %1380 = vrcp.f32 %v573_v40  ;;  %v597_v38 = vunpack.c.h.bf16 %v593_v37  ;;  %v596_v40 = vunpack.c.l.bf16 %v593_v37 }
 0x30d   :  { %1382 = vrcp.f32 %v580_v46 }
 0x317   :  { %v1377_v43 = vpop.eup %1376 }
 0x318   :  { %v1379_v44 = vpop.eup %1378 }
 0x319   :  { %v1381_v45 = vpop.eup %1380  ;;  %v584_v35 = vmul.f32 %v1379_v44, %v1377_v43 }
 0x31a   :  { %v583_v47 = vmul.f32 %v1381_v45, %v1820_v42  ;;  %v1383_v49 = vpop.eup %1382  ;;  %v592_v42 = vld [vmem:[#allocation4 + $0x30] sm:$0xff] }
 0x31b   :  { %v594_v53 = vunpack.c.l.bf16 %v592_v42  ;;  %v595_v54 = vunpack.c.h.bf16 %v592_v42 }
 0x31c   :  { %v1858_v48 = vadd.f32 %v584_v35, %v583_v47 }
 0x31e   :  { %1384 = vtanh.f32 %v1858_v48 }
 0x32b   :  { %v1385_v50 = vpop.eup %1384 }
 0x32c   :  { %v587_v51 = vmul.f32 %v1385_v50, %v1383_v49 }
 0x32e   :  { %589 = vst [vmem:[#allocation9 + $0x10] sm:$0xff] %v587_v51  ;;  %v590_v52 = vpack.c.bf16 %v587_v51, %v587_v51 }
 0x330   :  { %631 = vmatmul.mubr.bf16.vlgmr.msra.gmra.mxu0 %v590_v52  ;;  %672 = vmatmul.mubr.bf16.vlgmr.msra.gmra.mxu1 %v590_v52 }
 0x331   :  { %715 = vmatpush1.bf16.msra.mxu0 %v1652_v2  ;;  %756 = vmatpush1.bf16.msra.mxu1 %v1665_v7 }
 0x332   :  { %716 = vmatprep.subr.bf16.mxu0 %v1655_v3  ;;  %757 = vmatprep.subr.bf16.mxu1 %v1675_v10 }
 0x333   :  { %746 = vmatprep.mubr.bf16.mxu0 %v1610_v0  ;;  %787 = vmatprep.mubr.bf16.mxu1 %v1610_v0 }
 0x335   :  { %717 = vmatpush1.bf16.msra.mxu0 %v1658_v4  ;;  %758 = vmatpush1.bf16.msra.mxu1 %v1677_v11 }
 0x336   :  { %718 = vmatprep.subr.bf16.mxu0 %v1661_v5  ;;  %759 = vmatprep.subr.bf16.mxu1 %v1685_v14 }
 0x339   :  { %719 = vmatpush1.bf16.msra.mxu0 %v1668_v8  ;;  %760 = vmatpush1.bf16.msra.mxu1 %v1689_v15 }
 0x33a   :  { %720 = vmatprep.subr.bf16.mxu0 %v1672_v9  ;;  %761 = vmatprep.subr.bf16.mxu1 %v1692_v16 }
 0x33d   :  { %721 = vmatpush1.bf16.msra.mxu0 %v1681_v12  ;;  %762 = vmatpush1.bf16.msra.mxu1 %v1701_v19 }
 0x33e   :  { %722 = vmatprep.subr.bf16.mxu0 %v1683_v13  ;;  %763 = vmatprep.subr.bf16.mxu1 %v1704_v20 }
 0x341   :  { %723 = vmatpush1.bf16.msra.mxu0 %v1695_v17  ;;  %764 = vmatpush1.bf16.msra.mxu1 %v1713_v23 }
 0x342   :  { %724 = vmatprep.subr.bf16.mxu0 %v1698_v18  ;;  %765 = vmatprep.subr.bf16.mxu1 %v1716_v24 }
 0x345   :  { %725 = vmatpush1.bf16.msra.mxu0 %v1706_v21  ;;  %766 = vmatpush1.bf16.msra.mxu1 %v1725_v27 }
 0x346   :  { %726 = vmatprep.subr.bf16.mxu0 %v1709_v22  ;;  %767 = vmatprep.subr.bf16.mxu1 %v1728_v28 }
 0x349   :  { %727 = vmatpush1.bf16.msra.mxu0 %v1719_v25  ;;  %768 = vmatpush1.bf16.msra.mxu1 %v1735_v30 }
 0x34a   :  { %728 = vmatprep.subr.bf16.mxu0 %v1722_v26  ;;  %769 = vmatprep.subr.bf16.mxu1 %v1738_v31 }
 0x34d   :  { %729 = vmatpush1.bf16.msra.mxu0 %v1731_v29  ;;  %770 = vmatpush1.bf16.msra.mxu1 %v1742_v33 }
 0x34e   :  { %830 = vmatprep.subr.bf16.mxu0 %v1650_v1  ;;  %871 = vmatprep.subr.bf16.mxu1 %v1663_v6 }
 0x3f0   :  { %v632_v55 = vpop.f32.mrf.mxu0  ;;  %v673_v56 = vpop.f32.mrf.mxu1 }
 0x3f1   :  { %v633_v57 = vadd.f32 %v632_v55, %v594_v53  ;;  %v674_v44 = vadd.f32 %v673_v56, %v596_v40 }
 0x3f2   :  { %v634_v58 = vpop.f32.mrf.mxu0  ;;  %v675_v59 = vpop.f32.mrf.mxu1 }
 0x3f3   :  { %v1265_v60 = vmul.f32 -1.442695, %v633_v57  ;;  %v635_v61 = vadd.f32 %v634_v58, %v595_v54  ;;  %v676_v39 = vadd.f32 %v675_v59, %v597_v38 }
 0x3f4   :  { %v636_v62 = vpop.f32.mrf.mxu0  ;;  %v677_v63 = vpop.f32.mrf.mxu1 }
 0x3f5   :  { %1386 = vpow2.f32 %v1265_v60  ;;  %v1266_v32 = vmul.f32 -1.442695, %v635_v61  ;;  %v1267_v41 = vmul.f32 -1.442695, %v676_v39 }
 0x3f6   :  { %v637_v34 = vpop.f32.mrf.mxu0  ;;  %v678_v36 = vpop.f32.mrf.mxu1 }
 0x3f7   :  { %1388 = vpow2.f32 %v1266_v32 }
 0x3f8   :  { %1390 = vpow2.f32 %v1267_v41 }
 0x402   :  { %v1387_v43 = vpop.eup %1386 }
 0x403   :  { %v683_v45 = vadd.f32 1.0, %v1387_v43 }
 0x404   :  { %v1389_v46 = vpop.eup %1388 }
 0x405   :  { %1392 = vrcp.f32 %v683_v45  ;;  %v689_v35 = vadd.f32 1.0, %v1389_v46  ;;  %v1391_v47 = vpop.eup %1390 }
 0x406   :  { %1394 = vtanh.f32 %v674_v44  ;;  %v696_v52 = vadd.f32 1.0, %v1391_v47  ;;  %v709_v44 = vld [vmem:[#allocation4 + $0x48] sm:$0xff] }
 0x407   :  { %1396 = vrcp.f32 %v689_v35  ;;  %v712_v45 = vunpack.c.l.bf16 %v709_v44 }
 0x408   :  { %1398 = vrcp.f32 %v696_v52 }
 0x412   :  { %v1393_v49 = vpop.eup %1392 }
 0x413   :  { %v1395_v50 = vpop.eup %1394 }
 0x414   :  { %v1397_v51 = vpop.eup %1396  ;;  %v700_v42 = vmul.f32 %v1395_v50, %v1393_v49 }
 0x415   :  { %v699_v53 = vmul.f32 %v1397_v51, %v1858_v48  ;;  %v1399_v55 = vpop.eup %1398  ;;  %v708_v48 = vld [vmem:[#allocation4 + $0x40] sm:$0xff] }
 0x416   :  { %v710_v59 = vunpack.c.l.bf16 %v708_v48  ;;  %v711_v60 = vunpack.c.h.bf16 %v708_v48 }
 0x417   :  { %v1896_v54 = vadd.f32 %v700_v42, %v699_v53 }
 0x419   :  { %1400 = vtanh.f32 %v1896_v54 }
 0x426   :  { %v1401_v56 = vpop.eup %1400 }
 0x427   :  { %v703_v57 = vmul.f32 %v1401_v56, %v1399_v55 }
 0x429   :  { %705 = vst [vmem:[#allocation9 + $0x18] sm:$0xff] %v703_v57  ;;  %v706_v58 = vpack.c.bf16 %v703_v57, %v703_v57 }
 0x42b   :  { %747 = vmatmul.mubr.bf16.vlgmr.msra.gmra.mxu0 %v706_v58  ;;  %788 = vmatmul.mubr.bf16.vlgmr.msra.gmra.mxu1 %v706_v58 }
 0x42c   :  { %831 = vmatpush1.bf16.msra.mxu0 %v1652_v2  ;;  %872 = vmatpush1.bf16.msra.mxu1 %v1665_v7 }
 0x42d   :  { %832 = vmatprep.subr.bf16.mxu0 %v1655_v3  ;;  %873 = vmatprep.subr.bf16.mxu1 %v1675_v10 }
 0x42e   :  { %862 = vmatprep.mubr.bf16.mxu0 %v1610_v0  ;;  %903 = vmatprep.mubr.bf16.mxu1 %v1610_v0 }
 0x430   :  { %833 = vmatpush1.bf16.msra.mxu0 %v1658_v4  ;;  %874 = vmatpush1.bf16.msra.mxu1 %v1677_v11 }
 0x431   :  { %834 = vmatprep.subr.bf16.mxu0 %v1661_v5  ;;  %875 = vmatprep.subr.bf16.mxu1 %v1685_v14 }
 0x434   :  { %835 = vmatpush1.bf16.msra.mxu0 %v1668_v8  ;;  %876 = vmatpush1.bf16.msra.mxu1 %v1689_v15 }
 0x435   :  { %836 = vmatprep.subr.bf16.mxu0 %v1672_v9  ;;  %877 = vmatprep.subr.bf16.mxu1 %v1692_v16 }
 0x438   :  { %837 = vmatpush1.bf16.msra.mxu0 %v1681_v12  ;;  %878 = vmatpush1.bf16.msra.mxu1 %v1701_v19 }
 0x439   :  { %838 = vmatprep.subr.bf16.mxu0 %v1683_v13  ;;  %879 = vmatprep.subr.bf16.mxu1 %v1704_v20 }
 0x43c   :  { %839 = vmatpush1.bf16.msra.mxu0 %v1695_v17  ;;  %880 = vmatpush1.bf16.msra.mxu1 %v1713_v23 }
 0x43d   :  { %840 = vmatprep.subr.bf16.mxu0 %v1698_v18  ;;  %881 = vmatprep.subr.bf16.mxu1 %v1716_v24 }
 0x440   :  { %841 = vmatpush1.bf16.msra.mxu0 %v1706_v21  ;;  %882 = vmatpush1.bf16.msra.mxu1 %v1725_v27 }
 0x441   :  { %842 = vmatprep.subr.bf16.mxu0 %v1709_v22  ;;  %883 = vmatprep.subr.bf16.mxu1 %v1728_v28 }
 0x444   :  { %843 = vmatpush1.bf16.msra.mxu0 %v1719_v25  ;;  %884 = vmatpush1.bf16.msra.mxu1 %v1735_v30 }
 0x445   :  { %844 = vmatprep.subr.bf16.mxu0 %v1722_v26  ;;  %885 = vmatprep.subr.bf16.mxu1 %v1738_v31 }
 0x448   :  { %845 = vmatpush1.bf16.msra.mxu0 %v1731_v29  ;;  %886 = vmatpush1.bf16.msra.mxu1 %v1742_v33 }
 0x449   :  { %946 = vmatprep.subr.bf16.mxu0 %v1650_v1  ;;  %987 = vmatprep.subr.bf16.mxu1 %v1663_v6  ;;  %v713_v1 = vunpack.c.h.bf16 %v709_v44  ;;  %v1470_v44 = vld [vmem:[#allocation7 + $0xc4] ss:$16 sps:$4 sm:$0xff]  }
 0x4eb   :  { %v748_v61 = vpop.f32.mrf.mxu0  ;;  %v789_v62 = vpop.f32.mrf.mxu1 }
 0x4ec   :  { %v749_v63 = vadd.f32 %v748_v61, %v710_v59  ;;  %v790_v47 = vadd.f32 %v789_v62, %v712_v45  ;;  %v1473_v45 = vld [vmem:[#allocation7 + $0xc8] ss:$16 sps:$4 sm:$0xff]  }
 0x4ed   :  { %v750_v32 = vpop.f32.mrf.mxu0  ;;  %v791_v34 = vpop.f32.mrf.mxu1 }
 0x4ee   :  { %v1268_v36 = vmul.f32 -1.442695, %v749_v63  ;;  %v751_v37 = vadd.f32 %v750_v32, %v711_v60  ;;  %v792_v6 = vadd.f32 %v791_v34, %v713_v1  ;;  %v1471_v1 = vld [vmem:[#allocation7 + $0xcc] ss:$16 sps:$4 sm:$0xff]  }
 0x4ef   :  { %v752_v38 = vpop.f32.mrf.mxu0  ;;  %v793_v39 = vpop.f32.mrf.mxu1 }
 0x4f0   :  { %1402 = vpow2.f32 %v1268_v36  ;;  %v1269_v40 = vmul.f32 -1.442695, %v751_v37  ;;  %v1270_v46 = vmul.f32 -1.442695, %v792_v6  ;;  %v1472_v6 = vld [vmem:[#allocation7 + $0xc0] ss:$16 sps:$4 sm:$0xff]  }
 0x4f1   :  { %v753_v41 = vpop.f32.mrf.mxu0  ;;  %v794_v43 = vpop.f32.mrf.mxu1 }
 0x4f2   :  { %1404 = vpow2.f32 %v1269_v40  ;;  %v1468_v41 = vld [vmem:[#allocation7 + $0xe0] ss:$16 sps:$4 sm:$0xff]   ;;  %v1469_v43 = vld [vmem:[#allocation7 + $0xe8] ss:$16 sps:$4 sm:$0xff]  }
 0x4f3   :  { %1406 = vpow2.f32 %v1270_v46  ;;  %v1474_v46 = vld [vmem:[#allocation7 + $0xa4] ss:$16 sps:$4 sm:$0xff]  }
 0x4fd   :  { %v1403_v35 = vpop.eup %1402 }
 0x4fe   :  { %v799_v49 = vadd.f32 1.0, %v1403_v35  ;;  %v1475_v35 = vld [vmem:[#allocation7 + $0xac] ss:$16 sps:$4 sm:$0xff]  }
 0x4ff   :  { %v1405_v50 = vpop.eup %1404 }
 0x500   :  { %1408 = vrcp.f32 %v799_v49  ;;  %v805_v51 = vadd.f32 1.0, %v1405_v50  ;;  %v1407_v52 = vpop.eup %1406  ;;  %v1477_v49 = vld [vmem:[#allocation7 + $0xa8] ss:$16 sps:$4 sm:$0xff]   ;;  %v1478_v50 = vld [vmem:[#allocation7 + $0x84] ss:$16 sps:$4 sm:$0xff]  }
 0x501   :  { %1410 = vtanh.f32 %v790_v47  ;;  %v812_v56 = vadd.f32 1.0, %v1407_v52  ;;  %v1476_v47 = vld [vmem:[#allocation7 + $0xa0] ss:$16 sps:$4 sm:$0xff]  }
 0x502   :  { %1412 = vrcp.f32 %v805_v51  ;;  %v1479_v51 = vld [vmem:[#allocation7 + $0x8c] ss:$16 sps:$4 sm:$0xff]   ;;  %v1480_v52 = vld [vmem:[#allocation7 + $0x80] ss:$16 sps:$4 sm:$0xff]  }
 0x503   :  { %1414 = vrcp.f32 %v812_v56  ;;  %v1485_v56 = vld [vmem:[#allocation7 + $0x68] ss:$16 sps:$4 sm:$0xff]  }
 0x50d   :  { %v1409_v42 = vpop.eup %1408 }
 0x50e   :  { %v1411_v53 = vpop.eup %1410 }
 0x50f   :  { %v1413_v55 = vpop.eup %1412  ;;  %v816_v57 = vmul.f32 %v1411_v53, %v1409_v42  ;;  %v1481_v42 = vld [vmem:[#allocation7 + $0x88] ss:$16 sps:$4 sm:$0xff]   ;;  %v1483_v53 = vld [vmem:[#allocation7 + $0x6c] ss:$16 sps:$4 sm:$0xff]  }
 0x510   :  { %v815_v58 = vmul.f32 %v1413_v55, %v1896_v54  ;;  %v1415_v59 = vpop.eup %1414  ;;  %v1484_v55 = vld [vmem:[#allocation7 + $0x60] ss:$16 sps:$4 sm:$0xff]  }
 0x512   :  { %v1934_v48 = vadd.f32 %v816_v57, %v815_v58  ;;  %v1486_v57 = vld [vmem:[#allocation7 + $0x44] ss:$16 sps:$4 sm:$0xff]   ;;  %v1487_v58 = vld [vmem:[#allocation7 + $0x4c] ss:$16 sps:$4 sm:$0xff]  }
 0x514   :  { %1416 = vtanh.f32 %v1934_v48 }
 0x521   :  { %v1417_v60 = vpop.eup %1416 }
 0x522   :  { %v819_v61 = vmul.f32 %v1417_v60, %v1415_v59  ;;  %v1489_v59 = vld [vmem:[#allocation7 + $0x48] ss:$16 sps:$4 sm:$0xff]   ;;  %v1490_v60 = vld [vmem:[#allocation7 + $0x24] ss:$16 sps:$4 sm:$0xff]  }
 0x524   :  { %821 = vst [vmem:[#allocation9 + $0x20] sm:$0xff] %v819_v61  ;;  %v822_v62 = vpack.c.bf16 %v819_v61, %v819_v61  ;;  %v1491_v61 = vld [vmem:[#allocation7 + $0x2c] ss:$16 sps:$4 sm:$0xff]  }
 0x526   :  { %863 = vmatmul.mubr.bf16.vlgmr.msra.gmra.mxu0 %v822_v62  ;;  %904 = vmatmul.mubr.bf16.vlgmr.msra.gmra.mxu1 %v822_v62  ;;  %v1492_v62 = vld [vmem:[#allocation7 + $0x20] ss:$16 sps:$4 sm:$0xff]  }
 0x527   :  { %947 = vmatpush1.bf16.msra.mxu0 %v1652_v2  ;;  %988 = vmatpush1.bf16.msra.mxu1 %v1665_v7  ;;  %v1466_v2 = vld [vmem:[#allocation7 + $0xe4] ss:$16 sps:$4 sm:$0xff]  }
 0x528   :  { %948 = vmatprep.subr.bf16.mxu0 %v1655_v3  ;;  %989 = vmatprep.subr.bf16.mxu1 %v1675_v10  ;;  %v1467_v3 = vld [vmem:[#allocation7 + $0xec] ss:$16 sps:$4 sm:$0xff]  }
 0x529   :  { %978 = vmatprep.mubr.bf16.mxu0 %v1610_v0  ;;  %1019 = vmatprep.mubr.bf16.mxu1 %v1610_v0 }
 0x52b   :  { %949 = vmatpush1.bf16.msra.mxu0 %v1658_v4  ;;  %990 = vmatpush1.bf16.msra.mxu1 %v1677_v11  ;;  %v824_v4 = vld [vmem:[#allocation4 + $0x50] sm:$0xff] }
 0x52c   :  { %950 = vmatprep.subr.bf16.mxu0 %v1661_v5  ;;  %991 = vmatprep.subr.bf16.mxu1 %v1685_v14  ;;  %v826_v5 = vunpack.c.l.bf16 %v824_v4  ;;  %v827_v7 = vunpack.c.h.bf16 %v824_v4  ;;  %v1495_v4 = vld [vmem:[#allocation7 + $0xc] ss:$16 sps:$4 sm:$0xff]  }
 0x52f   :  { %951 = vmatpush1.bf16.msra.mxu0 %v1668_v8  ;;  %992 = vmatpush1.bf16.msra.mxu1 %v1689_v15 }
 0x530   :  { %952 = vmatprep.subr.bf16.mxu0 %v1672_v9  ;;  %993 = vmatprep.subr.bf16.mxu1 %v1692_v16 }
 0x533   :  { %953 = vmatpush1.bf16.msra.mxu0 %v1681_v12  ;;  %994 = vmatpush1.bf16.msra.mxu1 %v1701_v19 }
 0x534   :  { %954 = vmatprep.subr.bf16.mxu0 %v1683_v13  ;;  %995 = vmatprep.subr.bf16.mxu1 %v1704_v20  ;;  %v825_v20 = vld [vmem:[#allocation4 + $0x58] sm:$0xff] }
 0x537   :  { %955 = vmatpush1.bf16.msra.mxu0 %v1695_v17  ;;  %996 = vmatpush1.bf16.msra.mxu1 %v1713_v23  ;;  %v828_v23 = vunpack.c.l.bf16 %v825_v20 }
 0x538   :  { %956 = vmatprep.subr.bf16.mxu0 %v1698_v18  ;;  %997 = vmatprep.subr.bf16.mxu1 %v1716_v24 }
 0x53b   :  { %957 = vmatpush1.bf16.msra.mxu0 %v1706_v21  ;;  %998 = vmatpush1.bf16.msra.mxu1 %v1725_v27  ;;  %v829_v21 = vunpack.c.h.bf16 %v825_v20 }
 0x53c   :  { %958 = vmatprep.subr.bf16.mxu0 %v1709_v22  ;;  %999 = vmatprep.subr.bf16.mxu1 %v1728_v28 }
 0x53f   :  { %959 = vmatpush1.bf16.msra.mxu0 %v1719_v25  ;;  %1000 = vmatpush1.bf16.msra.mxu1 %v1735_v30 }
 0x540   :  { %960 = vmatprep.subr.bf16.mxu0 %v1722_v26  ;;  %1001 = vmatprep.subr.bf16.mxu1 %v1738_v31 }
 0x543   :  { %961 = vmatpush1.bf16.msra.mxu0 %v1731_v29  ;;  %1002 = vmatpush1.bf16.msra.mxu1 %v1742_v33 }
 0x544   :  { %1062 = vmatprep.subr.bf16.mxu0 %v1466_v2  ;;  %1103 = vmatprep.subr.bf16.mxu1 %v1467_v3  ;;  %v1493_v2 = vld [vmem:[#allocation7 + $0x28] ss:$16 sps:$4 sm:$0xff]   ;;  %v1494_v3 = vld [vmem:[#allocation7 + $0x4] ss:$16 sps:$4 sm:$0xff]  }
 0x5e6   :  { %v864_v8 = vpop.f32.mrf.mxu0  ;;  %v905_v9 = vpop.f32.mrf.mxu1 }
 0x5e7   :  { %v865_v10 = vadd.f32 %v864_v8, %v826_v5  ;;  %v906_v26 = vadd.f32 %v905_v9, %v828_v23  ;;  %v1496_v5 = vld [vmem:[#allocation7] ss:$16 sps:$4 sm:$0xff]   ;;  %v941_v23 = vld [vmem:[#allocation4 + $0x68] sm:$0xff] }
 0x5e8   :  { %v866_v11 = vpop.f32.mrf.mxu0  ;;  %v907_v12 = vpop.f32.mrf.mxu1  ;;  %v940_v8 = vld [vmem:[#allocation4 + $0x60] sm:$0xff] }
 0x5e9   :  { %v1271_v13 = vmul.f32 -1.442695, %v865_v10  ;;  %v867_v14 = vadd.f32 %v866_v11, %v827_v7  ;;  %v908_v22 = vadd.f32 %v907_v12, %v829_v21  ;;  %v1497_v7 = vld [vmem:[#allocation7 + $0x8] ss:$16 sps:$4 sm:$0xff]   ;;  %v942_v9 = vunpack.c.l.bf16 %v940_v8 }
 0x5ea   :  { %v868_v15 = vpop.f32.mrf.mxu0  ;;  %v909_v16 = vpop.f32.mrf.mxu1  ;;  %v943_v10 = vunpack.c.h.bf16 %v940_v8 }
 0x5eb   :  { %1418 = vpow2.f32 %v1271_v13  ;;  %v1272_v17 = vmul.f32 -1.442695, %v867_v14  ;;  %v1273_v24 = vmul.f32 -1.442695, %v908_v22 }
 0x5ec   :  { %v869_v18 = vpop.f32.mrf.mxu0  ;;  %v910_v19 = vpop.f32.mrf.mxu1 }
 0x5ed   :  { %1420 = vpow2.f32 %v1272_v17 }
 0x5ee   :  { %1422 = vpow2.f32 %v1273_v24  ;;  %v945_v24 = vunpack.c.h.bf16 %v941_v23 }
 0x5f8   :  { %v1419_v25 = vpop.eup %1418 }
 0x5f9   :  { %v915_v27 = vadd.f32 1.0, %v1419_v25 }
 0x5fa   :  { %v1421_v28 = vpop.eup %1420 }
 0x5fb   :  { %1424 = vrcp.f32 %v915_v27  ;;  %v921_v29 = vadd.f32 1.0, %v1421_v28  ;;  %v1423_v30 = vpop.eup %1422 }
 0x5fc   :  { %1426 = vtanh.f32 %v906_v26  ;;  %v928_v63 = vadd.f32 1.0, %v1423_v30  ;;  %v944_v26 = vunpack.c.l.bf16 %v941_v23 }
 0x5fd   :  { %1428 = vrcp.f32 %v921_v29 }
 0x5fe   :  { %1430 = vrcp.f32 %v928_v63 }
 0x608   :  { %v1425_v31 = vpop.eup %1424 }
 0x609   :  { %v1427_v33 = vpop.eup %1426 }
 0x60a   :  { %v1429_v54 = vpop.eup %1428  ;;  %v932_v32 = vmul.f32 %v1427_v33, %v1425_v31 }
 0x60b   :  { %v931_v34 = vmul.f32 %v1429_v54, %v1934_v48  ;;  %v1431_v37 = vpop.eup %1430  ;;  %v1488_v48 = vld [vmem:[#allocation7 + $0x40] ss:$16 sps:$4 sm:$0xff]  }
 0x60d   :  { %v1970_v36 = vadd.f32 %v932_v32, %v931_v34 }
 0x60f   :  { %1432 = vtanh.f32 %v1970_v36 }
 0x61c   :  { %v1433_v38 = vpop.eup %1432 }
 0x61d   :  { %v935_v39 = vmul.f32 %v1433_v38, %v1431_v37 }
 0x61f   :  { %937 = vst [vmem:[#allocation9 + $0x28] sm:$0xff] %v935_v39  ;;  %v938_v40 = vpack.c.bf16 %v935_v39, %v935_v39 }
 0x621   :  { %979 = vmatmul.mubr.bf16.vlgmr.msra.gmra.mxu0 %v938_v40  ;;  %1020 = vmatmul.mubr.bf16.vlgmr.msra.gmra.mxu1 %v938_v40 }
 0x622   :  { %1063 = vmatpush1.bf16.msra.mxu0 %v1468_v41  ;;  %1104 = vmatpush1.bf16.msra.mxu1 %v1469_v43 }
 0x623   :  { %1064 = vmatprep.subr.bf16.mxu0 %v1470_v44  ;;  %1105 = vmatprep.subr.bf16.mxu1 %v1471_v1 }
 0x624   :  { %1094 = vmatprep.mubr.bf16.mxu0 %v1610_v0  ;;  %1135 = vmatprep.mubr.bf16.mxu1 %v1610_v0  ;;  %v1482_v0 = vld [vmem:[#allocation7 + $0x64] ss:$16 sps:$4 sm:$0xff]  }
 0x626   :  { %1065 = vmatpush1.bf16.msra.mxu0 %v1472_v6  ;;  %1106 = vmatpush1.bf16.msra.mxu1 %v1473_v45  ;;  %v1056_v6 = vld [vmem:[#allocation4 + $0x70] sm:$0xff] }
 0x627   :  { %1066 = vmatprep.subr.bf16.mxu0 %v1474_v46  ;;  %1107 = vmatprep.subr.bf16.mxu1 %v1475_v35  ;;  %v1058_v45 = vunpack.c.l.bf16 %v1056_v6  ;;  %v1059_v46 = vunpack.c.h.bf16 %v1056_v6 }
 0x62a   :  { %1067 = vmatpush1.bf16.msra.mxu0 %v1476_v47  ;;  %1108 = vmatpush1.bf16.msra.mxu1 %v1477_v49 }
 0x62b   :  { %1068 = vmatprep.subr.bf16.mxu0 %v1478_v50  ;;  %1109 = vmatprep.subr.bf16.mxu1 %v1479_v51 }
 0x62e   :  { %1069 = vmatpush1.bf16.msra.mxu0 %v1480_v52  ;;  %1110 = vmatpush1.bf16.msra.mxu1 %v1481_v42 }
 0x62f   :  { %1070 = vmatprep.subr.bf16.mxu0 %v1482_v0  ;;  %1111 = vmatprep.subr.bf16.mxu1 %v1483_v53 }
 0x632   :  { %1071 = vmatpush1.bf16.msra.mxu0 %v1484_v55  ;;  %1112 = vmatpush1.bf16.msra.mxu1 %v1485_v56 }
 0x633   :  { %1072 = vmatprep.subr.bf16.mxu0 %v1486_v57  ;;  %1113 = vmatprep.subr.bf16.mxu1 %v1487_v58  ;;  %v1057_v57 = vld [vmem:[#allocation4 + $0x78] sm:$0xff] }
 0x634   :  { %v1061_v58 = vunpack.c.h.bf16 %v1057_v57 }
 0x636   :  { %1073 = vmatpush1.bf16.msra.mxu0 %v1488_v48  ;;  %1114 = vmatpush1.bf16.msra.mxu1 %v1489_v59  ;;  %v1060_v59 = vunpack.c.l.bf16 %v1057_v57 }
 0x637   :  { %1074 = vmatprep.subr.bf16.mxu0 %v1490_v60  ;;  %1115 = vmatprep.subr.bf16.mxu1 %v1491_v61 }
 0x63a   :  { %1075 = vmatpush1.bf16.msra.mxu0 %v1492_v62  ;;  %1116 = vmatpush1.bf16.msra.mxu1 %v1493_v2 }
 0x63b   :  { %1076 = vmatprep.subr.bf16.mxu0 %v1494_v3  ;;  %1117 = vmatprep.subr.bf16.mxu1 %v1495_v4 }
 0x63e   :  { %1077 = vmatpush1.bf16.msra.mxu0 %v1496_v5  ;;  %1118 = vmatpush1.bf16.msra.mxu1 %v1497_v7 }
 0x6e1   :  { %v980_v11 = vpop.f32.mrf.mxu0  ;;  %v1021_v12 = vpop.f32.mrf.mxu1 }
 0x6e2   :  { %v981_v13 = vadd.f32 %v980_v11, %v942_v9  ;;  %v1022_v29 = vadd.f32 %v1021_v12, %v944_v26 }
 0x6e3   :  { %v982_v14 = vpop.f32.mrf.mxu0  ;;  %v1023_v15 = vpop.f32.mrf.mxu1 }
 0x6e4   :  { %v1274_v16 = vmul.f32 -1.442695, %v981_v13  ;;  %v983_v17 = vadd.f32 %v982_v14, %v943_v10  ;;  %v1024_v25 = vadd.f32 %v1023_v15, %v945_v24 }
 0x6e5   :  { %v984_v18 = vpop.f32.mrf.mxu0  ;;  %v1025_v19 = vpop.f32.mrf.mxu1 }
 0x6e6   :  { %1434 = vpow2.f32 %v1274_v16  ;;  %v1275_v20 = vmul.f32 -1.442695, %v983_v17  ;;  %v1276_v27 = vmul.f32 -1.442695, %v1024_v25 }
 0x6e7   :  { %v985_v21 = vpop.f32.mrf.mxu0  ;;  %v1026_v22 = vpop.f32.mrf.mxu1 }
 0x6e8   :  { %1436 = vpow2.f32 %v1275_v20 }
 0x6e9   :  { %1438 = vpow2.f32 %v1276_v27 }
 0x6f3   :  { %v1435_v28 = vpop.eup %1434 }
 0x6f4   :  { %v1031_v30 = vadd.f32 1.0, %v1435_v28 }
 0x6f5   :  { %v1437_v31 = vpop.eup %1436 }
 0x6f6   :  { %1440 = vrcp.f32 %v1031_v30  ;;  %v1037_v33 = vadd.f32 1.0, %v1437_v31  ;;  %v1439_v54 = vpop.eup %1438 }
 0x6f7   :  { %1442 = vtanh.f32 %v1022_v29  ;;  %v1044_v37 = vadd.f32 1.0, %v1439_v54 }
 0x6f8   :  { %1444 = vrcp.f32 %v1037_v33 }
 0x6f9   :  { %1446 = vrcp.f32 %v1044_v37 }
 0x703   :  { %v1441_v63 = vpop.eup %1440 }
 0x704   :  { %v1443_v32 = vpop.eup %1442 }
 0x705   :  { %v1445_v34 = vpop.eup %1444  ;;  %v1048_v38 = vmul.f32 %v1443_v32, %v1441_v63 }
 0x706   :  { %v1047_v39 = vmul.f32 %v1445_v34, %v1970_v36  ;;  %v1447_v41 = vpop.eup %1446 }
 0x708   :  { %v1049_v40 = vadd.f32 %v1048_v38, %v1047_v39 }
 0x70a   :  { %1448 = vtanh.f32 %v1049_v40 }
 0x717   :  { %v1449_v43 = vpop.eup %1448 }
 0x718   :  { %v1051_v44 = vmul.f32 %v1449_v43, %v1447_v41 }
 0x71a   :  { %1053 = vst [vmem:[#allocation9 + $0x30] sm:$0xff] %v1051_v44  ;;  %v1054_v1 = vpack.c.bf16 %v1051_v44, %v1051_v44 }
 0x71c   :  { %1095 = vmatmul.mubr.bf16.vlgmr.msra.gmra.mxu0 %v1054_v1  ;;  %1136 = vmatmul.mubr.bf16.vlgmr.msra.gmra.mxu1 %v1054_v1 }
 0x7dc   :  { %v1096_v35 = vpop.f32.mrf.mxu0  ;;  %v1137_v47 = vpop.f32.mrf.mxu1 }
 0x7dd   :  { %v1097_v49 = vadd.f32 %v1096_v35, %v1058_v45  ;;  %v1138_v62 = vadd.f32 %v1137_v47, %v1060_v59 }
 0x7de   :  { %v1098_v50 = vpop.f32.mrf.mxu0  ;;  %v1139_v51 = vpop.f32.mrf.mxu1 }
 0x7df   :  { %v1277_v52 = vmul.f32 -1.442695, %v1097_v49  ;;  %v1099_v36 = vadd.f32 %v1098_v50, %v1059_v46  ;;  %v1140_v48 = vadd.f32 %v1139_v51, %v1061_v58 }
 0x7e0   :  { %v1100_v42 = vpop.f32.mrf.mxu0  ;;  %v1141_v0 = vpop.f32.mrf.mxu1 }
 0x7e1   :  { %1450 = vpow2.f32 %v1277_v52  ;;  %v1278_v53 = vmul.f32 -1.442695, %v1099_v36  ;;  %v1279_v60 = vmul.f32 -1.442695, %v1140_v48 }
 0x7e2   :  { %v1101_v55 = vpop.f32.mrf.mxu0  ;;  %v1142_v56 = vpop.f32.mrf.mxu1 }
 0x7e3   :  { %1452 = vpow2.f32 %v1278_v53 }
 0x7e4   :  { %1454 = vpow2.f32 %v1279_v60 }
 0x7ee   :  { %v1451_v61 = vpop.eup %1450 }
 0x7ef   :  { %v1147_v2 = vadd.f32 1.0, %v1451_v61 }
 0x7f0   :  { %v1453_v3 = vpop.eup %1452 }
 0x7f1   :  { %1456 = vrcp.f32 %v1147_v2  ;;  %v1153_v4 = vadd.f32 1.0, %v1453_v3  ;;  %v1455_v5 = vpop.eup %1454 }
 0x7f2   :  { %1458 = vtanh.f32 %v1138_v62  ;;  %v1160_v10 = vadd.f32 1.0, %v1455_v5 }
 0x7f3   :  { %1460 = vrcp.f32 %v1153_v4 }
 0x7f4   :  { %1462 = vrcp.f32 %v1160_v10 }
 0x7fe   :  { %v1457_v7 = vpop.eup %1456 }
 0x7ff   :  { %v1459_v8 = vpop.eup %1458 }
 0x800   :  { %v1461_v9 = vpop.eup %1460  ;;  %v1164_v11 = vmul.f32 %v1459_v8, %v1457_v7 }
 0x801   :  { %v1163_v12 = vmul.f32 %v1461_v9, %v1049_v40  ;;  %v1463_v14 = vpop.eup %1462 }
 0x803   :  { %v1165_v13 = vadd.f32 %v1164_v11, %v1163_v12 }
 0x805   :  { %1178 = vst [vmem:[#allocation12] sm:$0xff] %v1165_v13  ;;  %1464 = vtanh.f32 %v1165_v13 }
 0x812   :  { %v1465_v15 = vpop.eup %1464 }
 0x813   :  { %v1167_v16 = vmul.f32 %v1465_v15, %v1463_v14 }
 0x815   :  { %1169 = vst [vmem:[#allocation9 + $0x38] sm:$0xff] %v1167_v16  ;;  %v1170_v17 = vpack.c.bf16 %v1167_v16, %v1167_v16 }
 0x816   :  { %1549 = shalt.err (!%p1546_p0)
}
 0x817   :  { %s1614_s6 = smov 128   ;;  %s1615_s7 = smov 8   ;;  %1171 = vst [vmem:[#allocation2] sm:$0xf] %v1170_v17  ;;  %v1176_v18 = vunpack.c.l.bf16 %v1170_v17 }
 0x818   :  { %1190 = dma.vmem_to_hbm [thread:$0]  %s1185_s1, 1024, %s1987_s2, [#allocation6], %s1614_s6, %s1614_s6, %s1615_s7  }
 0x819   :  { %1177 = vst [vmem:[#allocation10] sm:$0xff] %v1176_v18  ;;  %s1558_s10 = scalar_lea.vmem %s1198_s28, 128  ;;  %p1563_p2 = scmp.lt.s32.totalorder %s1198_s28, %s1198_s28 }
 0x81a   :  { %p1559_p1 = scmp.ne.s32.totalorder %s1198_s28, %s1558_s10  ;;  %p1564_p3 = scmp.lt.s32.totalorder %s1558_s10, %s1558_s10 }
 0x81c   :  { %p1565_p4 = por %p1564_p3, %p1563_p2 }
 0x81e   :  { %p1566_p5 = pnand %p1565_p4, %p1559_p1 }
 0x820   :  { %1569 = shalt.err (!%p1566_p5)
}
 0x821   :  { %1200 = dma.vmem_to_hbm [thread:$0]  %s1198_s28, 128, %s1988_s3, [#allocation11]  }
 0x822   :  { %s1578_s13 = scalar_lea.vmem %s1208_s30, 128  ;;  %p1583_p7 = scmp.lt.s32.totalorder %s1208_s30, %s1208_s30 }
 0x823   :  { %p1579_p6 = scmp.ne.s32.totalorder %s1208_s30, %s1578_s13  ;;  %p1584_p8 = scmp.lt.s32.totalorder %s1578_s13, %s1578_s13 }
 0x825   :  { %p1585_p9 = por %p1584_p8, %p1583_p7 }
 0x827   :  { %p1586_p10 = pnand %p1585_p9, %p1579_p6 }
 0x829   :  { %1589 = shalt.err (!%p1586_p10)
}
 0x82a   :  { %1210 = dma.vmem_to_hbm [thread:$0]  %s1208_s30, 128, %s1989_s4, [#allocation11]  }
 0x82b   :  { %1602 = dma.done.wait [#allocation6], 1024  }
 0x82c   :  { %1603 = vsyncadd [#allocation6], 4294966272 }
 0x82d   :  { %1604 = dma.done.wait [#allocation11], 256  }
 0x82e   :  { %1605 = vsyncadd [#allocation11], 4294967040 }
 0x82f   :  { %1220 = vsyncpa [#allocation5], 1 }
 0x830   :  { %1221 = vsyncpa [#allocation8], 1 }
 0x831   :  { %1222 = vsyncpa [#allocation6], 1 }
 0x832   :  { %1223 = vsyncpa [#allocation11], 1 }

</bundles_post_ra>
